<compile_context>
chip_gen: v5e
topology: v5e:2x2
jax: 0.10.0
libtpu: 0.0.40
codegen_flags: <defaults>
</compile_context>

<pallas_src>
import functools

import jax
import jax.numpy as jnp
from jax.experimental import pallas as pl
from jax.experimental.pallas import tpu as pltpu

EPS = 1e-5  # PyTorch InstanceNorm2d default


def _residual_block_kernel(x_ref, m_ref, w1_ref, g1_ref, b1_ref,
                           w2_ref, g2_ref, b2_ref, out_ref, hext_ref,
                           *, wp, off, pw, n_pix):
    # x_ref:    (1, C, E)  halo'ed, zero-padded, spatially-flattened input
    # m_ref:    (1, PW)    1.0 at interior pixel positions, 0.0 at pad/tail
    # w*_ref:   (3, 3, C, C)  per-tap (C_out, C_in) weight matrices
    # g*/b*:    (C, 1)     instance-norm affine scale / shift
    # out_ref:  (1, C, PW) lane-dense output slab
    # hext_ref: (C, E)     persistent VMEM scratch: halo'ed ReLU(IN1(conv1))
    C = out_ref.shape[1]
    E = hext_ref.shape[1]
    inv_n = 1.0 / float(n_pix)

    mask = m_ref[...]            # (1, PW) f32
    mvalid = mask > 0.0          # (1, PW) bool

    # One-time halo zeroing of the persistent scratch; the interior
    # [off, off+pw) is fully overwritten every grid step, so it is never
    # re-zeroed.  The jnp.where-masked statistics below make the result
    # independent of halo contents anyway, so this stays correct even if a
    # megacore partition starts this core's chunk at program_id != 0.
    @pl.when(pl.program_id(0) == 0)
    def _():
        hext_ref[:, :off] = jnp.zeros((C, off), jnp.float32)
        hext_ref[:, off + pw:] = jnp.zeros((C, E - off - pw), jnp.float32)

    def conv3x3(tap_fn, w_ref):
        # 3x3 conv (pad=1) as 9 shifted matmuls with lane-dense N = pw.
        acc = None
        for kh in range(3):
            for kw in range(3):
                d = (kh - 1) * wp + (kw - 1)
                t = jnp.dot(w_ref[kh, kw], tap_fn(d),
                            preferred_element_type=jnp.float32)
                acc = t if acc is None else acc + t
        return acc

    def inst_norm(acc, g_ref, b_ref):
        # Single-pass masked InstanceNorm (biased variance) + affine.
        am = jnp.where(mvalid, acc, 0.0)                      # NaN-safe mask
        mean = jnp.sum(am, axis=1, keepdims=True) * inv_n     # (C, 1)
        var = jnp.sum(am * am, axis=1, keepdims=True) * inv_n - mean * mean
        return (acc - mean) * jax.lax.rsqrt(var + EPS) * g_ref[...] + b_ref[...]

    # conv1 -> IN1 -> ReLU; re-zero pad/tail lanes so conv2 sees zero padding.
    acc1 = conv3x3(lambda d: x_ref[0, :, off + d:off + d + pw], w1_ref)
    h1 = jnp.maximum(inst_norm(acc1, g1_ref, b1_ref), 0.0) * mask
    hext_ref[:, off:off + pw] = h1

    # conv2 -> IN2
    acc2 = conv3x3(lambda d: hext_ref[:, off + d:off + d + pw], w2_ref)
    h2 = inst_norm(acc2, g2_ref, b2_ref)

    # Residual add (input re-read only here -> short live range) and a single
    # lane-dense (pw % 128 == 0) unmasked store.
    out_ref[0] = x_ref[0, :, off:off + pw] + h2


def residual_block_nchw(x_nchw, w1_hwio, g1, b1, w2_hwio, g2, b2):
    """PyTorch-layout entry point: x (N, C, H, W) f32, conv weights in HWIO
    (3, 3, C_in, C_out), gamma/beta of size C.  Returns (N, C, H, W)."""
    N, C, H, W = x_nchw.shape
    Hp, Wp = H + 2, W + 2
    P = Hp * Wp
    PW = ((P + 127) // 128) * 128            # lane-dense working length
    OFF = ((Wp + 1 + 127) // 128) * 128      # halo >= one padded row + 1
    E = 2 * OFF + PW                         # halo'ed buffer length

    # ---- wrapper-side layout plumbing (free XLA reshapes / pads) ----
    xflat = jnp.pad(x_nchw.astype(jnp.float32),
                    ((0, 0), (0, 0), (1, 1), (1, 1))).reshape(N, C, P)
    xbuf = jnp.pad(xflat, ((0, 0), (0, 0), (OFF, E - OFF - P)))   # (N, C, E)

    # interior-pixel mask on the flattened padded grid
    p = jnp.arange(PW)
    r, c = p // Wp, p % Wp
    interior = (p < P) & (r >= 1) & (r <= H) & (c >= 1) & (c <= W)
    mask = interior.astype(jnp.float32).reshape(1, PW)

    # per-tap (C_out, C_in) weight matrices, affine params as (C, 1)
    w1_t = jnp.transpose(w1_hwio, (0, 1, 3, 2)).astype(jnp.float32)
    w2_t = jnp.transpose(w2_hwio, (0, 1, 3, 2)).astype(jnp.float32)
    g1c, b1c = g1.reshape(C, 1), b1.reshape(C, 1)
    g2c, b2c = g2.reshape(C, 1), b2.reshape(C, 1)

    kernel = functools.partial(_residual_block_kernel,
                               wp=Wp, off=OFF, pw=PW, n_pix=H * W)

    def const_spec(shape):
        # constant-index operands: single-buffered (no pointless double buffer)
        return pl.BlockSpec(shape, lambda n, _r=len(shape): (0,) * _r,
                            pipeline_mode=pl.Buffered(1))

    # Generous upper bound on the per-step VMEM footprint (+ headroom), kept
    # well under the v7x 64 MiB/TC physical budget.
    vmem_est = 4 * (3 * C * E + 2 * C * PW + 14 * C * PW
                    + 2 * 9 * C * C + PW) + (2 << 20)
    vmem_limit = int(min(max(vmem_est, 32 << 20), 48 << 20))

    # TODO(synk): for very large H*W*C (v7x has only 64 MiB VMEM/TC), add a
    # spatial row-tile grid axis with a two-pass InstanceNorm (sum/sumsq pass,
    # then normalize) instead of the whole-image-per-sample blocks used here.
    yflat = pl.pallas_call(
        kernel,
        out_shape=jax.ShapeDtypeStruct((N, C, PW), jnp.float32),
        grid_spec=pltpu.PrefetchScalarGridSpec(
            num_scalar_prefetch=0,
            grid=(N,),
            in_specs=[
                pl.BlockSpec((1, C, E), lambda n: (n, 0, 0)),
                const_spec((1, PW)),
                const_spec((3, 3, C, C)),
                const_spec((C, 1)),
                const_spec((C, 1)),
                const_spec((3, 3, C, C)),
                const_spec((C, 1)),
                const_spec((C, 1)),
            ],
            out_specs=pl.BlockSpec((1, C, PW), lambda n: (n, 0, 0)),
            scratch_shapes=[pltpu.VMEM((C, E), jnp.float32)],
        ),
        compiler_params=pltpu.CompilerParams(
            dimension_semantics=("parallel",),
            vmem_limit_bytes=vmem_limit),
    )(xbuf, mask, w1_t, g1c, b1c, w2_t, g2c, b2c)

    # undo the wrapper-side layout: keep interior pixels, back to NCHW
    y = yflat[:, :, :P].reshape(N, C, Hp, Wp)[:, :, 1:H + 1, 1:W + 1]
    return y


# ---------------- pure-JAX reference (same math, NHWC) ----------------
def _ref_residual_block_nhwc(x, w1, g1, b1, w2, g2, b2):
    def conv3x3(inp, w):
        ip = jnp.pad(inp, ((0, 0), (1, 1), (1, 1), (0, 0)))
        N, Hp, Wp, C = ip.shape
        H, W = Hp - 2, Wp - 2
        out = jnp.zeros((N, H, W, w.shape[-1]), jnp.float32)
        for kh in range(3):
            for kw in range(3):
                out = out + jnp.einsum('nhwc,cd->nhwd',
                                       ip[:, kh:kh + H, kw:kw + W, :], w[kh, kw])
        return out

    def inorm(h, g, b):
        mean = jnp.mean(h, axis=(1, 2), keepdims=True)
        var = jnp.mean((h - mean) ** 2, axis=(1, 2), keepdims=True)
        return ((h - mean) * jax.lax.rsqrt(var + EPS)
                * g.reshape(1, 1, 1, -1) + b.reshape(1, 1, 1, -1))

    h = jnp.maximum(inorm(conv3x3(x, w1), g1, b1), 0.0)
    h = inorm(conv3x3(h, w2), g2, b2)
    return x + h


if __name__ == "__main__":
    N, C, H, W = 2, 4, 16, 16

    key = jax.random.PRNGKey(0)
    kx, kw1, kw2, kg1, kb1, kg2, kb2 = jax.random.split(key, 7)

    # input in PyTorch NCHW layout
    x_nchw = jax.random.normal(kx, (N, C, H, W), dtype=jnp.float32)

    # deterministic parameter init (shapes from ResidualBlock(in_features=C))
    w1 = 0.1 * jax.random.normal(kw1, (3, 3, C, C), dtype=jnp.float32)  # HWIO
    w2 = 0.1 * jax.random.normal(kw2, (3, 3, C, C), dtype=jnp.float32)  # HWIO
    g1 = 1.0 + 0.1 * jax.random.normal(kg1, (1, C), dtype=jnp.float32)
    b1 = 0.1 * jax.random.normal(kb1, (1, C), dtype=jnp.float32)
    g2 = 1.0 + 0.1 * jax.random.normal(kg2, (1, C), dtype=jnp.float32)
    b2 = 0.1 * jax.random.normal(kb2, (1, C), dtype=jnp.float32)

    y = residual_block_nchw(x_nchw, w1, g1, b1, w2, g2, b2)
    y = jax.block_until_ready(y)

    # correctness check against pure-JAX reference
    x_nhwc = jnp.transpose(x_nchw, (0, 2, 3, 1))
    y_ref = jnp.transpose(
        _ref_residual_block_nhwc(x_nhwc, w1, g1, b1, w2, g2, b2), (0, 3, 1, 2))
    assert y.shape == (N, C, H, W)
    max_err = float(jnp.max(jnp.abs(y - y_ref)))
    assert jnp.allclose(y, y_ref, atol=5e-4, rtol=5e-4), max_err

    print("KERNEL_OK")
</pallas_src>

<mosaic_0001>
module attributes {stable_mosaic.version = 11 : i64} {
  func.func @_residual_block_kernel(%arg0: i32, %arg1: memref<1x4x640xf32, #tpu.memory_space<vmem>>, %arg2: memref<1x384xf32, #tpu.memory_space<vmem>>, %arg3: memref<3x3x4x4xf32, #tpu.memory_space<vmem>>, %arg4: memref<4x1xf32, #tpu.memory_space<vmem>>, %arg5: memref<4x1xf32, #tpu.memory_space<vmem>>, %arg6: memref<3x3x4x4xf32, #tpu.memory_space<vmem>>, %arg7: memref<4x1xf32, #tpu.memory_space<vmem>>, %arg8: memref<4x1xf32, #tpu.memory_space<vmem>>, %arg9: memref<1x4x384xf32, #tpu.memory_space<vmem>>, %arg10: memref<4x640xf32, #tpu.memory_space<vmem>>) attributes {dimension_semantics = [#tpu.dimension_semantics<parallel>], iteration_bounds = array<i64: 2>, scalar_prefetch = 0 : i64, scratch_operands = 1 : i64, tpu.core_type = #tpu.core_type<tc>, window_params = [{transform_indices = @transform_0, window_bounds = array<i64: 1, 4, 640>}, {pipeline_mode = #tpu.pipeline_mode<synchronous>, transform_indices = @transform_1, window_bounds = array<i64: 1, 384>}, {pipeline_mode = #tpu.pipeline_mode<synchronous>, transform_indices = @transform_2, window_bounds = array<i64: 3, 3, 4, 4>}, {pipeline_mode = #tpu.pipeline_mode<synchronous>, transform_indices = @transform_3, window_bounds = array<i64: 4, 1>}, {pipeline_mode = #tpu.pipeline_mode<synchronous>, transform_indices = @transform_4, window_bounds = array<i64: 4, 1>}, {pipeline_mode = #tpu.pipeline_mode<synchronous>, transform_indices = @transform_5, window_bounds = array<i64: 3, 3, 4, 4>}, {pipeline_mode = #tpu.pipeline_mode<synchronous>, transform_indices = @transform_6, window_bounds = array<i64: 4, 1>}, {pipeline_mode = #tpu.pipeline_mode<synchronous>, transform_indices = @transform_7, window_bounds = array<i64: 4, 1>}, {transform_indices = @transform_8, window_bounds = array<i64: 1, 4, 384>}]} {
    %c0 = arith.constant 0 : index
    %c0_0 = arith.constant 0 : index
    %0 = vector.load %arg2[%c0, %c0_0] : memref<1x384xf32, #tpu.memory_space<vmem>>, vector<1x384xf32>
    %cst = arith.constant 0.000000e+00 : f32
    %1 = vector.broadcast %cst : f32 to vector<1x384xf32>
    %2 = arith.cmpf ogt, %0, %1 : vector<1x384xf32>
    %c0_i32 = arith.constant 0 : i32
    %3 = arith.cmpi eq, %arg0, %c0_i32 : i32
    %4 = arith.extui %3 : i1 to i32
    %c0_i32_1 = arith.constant 0 : i32
    %5 = arith.cmpi ne, %4, %c0_i32_1 : i32
    scf.if %5 {
      %cst_155 = arith.constant 0.000000e+00 : f32
      %170 = vector.broadcast %cst_155 : f32 to vector<4x128xf32>
      %c0_156 = arith.constant 0 : index
      %c0_157 = arith.constant 0 : index
      %171 = vector.load %arg10[%c0_156, %c0_157] : memref<4x640xf32, #tpu.memory_space<vmem>>, vector<4x128xf32>
      tpu.vector_store %arg10[%c0_156, %c0_157], %170 {strides = array<i32>} : memref<4x640xf32, #tpu.memory_space<vmem>>, vector<4x128xf32>,
      %cst_158 = arith.constant 0.000000e+00 : f32
      %172 = vector.broadcast %cst_158 : f32 to vector<4x128xf32>
      %c0_159 = arith.constant 0 : index
      %c512 = arith.constant 512 : index
      %173 = vector.load %arg10[%c0_159, %c512] : memref<4x640xf32, #tpu.memory_space<vmem>>, vector<4x128xf32>
      tpu.vector_store %arg10[%c0_159, %c512], %172 {strides = array<i32>} : memref<4x640xf32, #tpu.memory_space<vmem>>, vector<4x128xf32>,
    } else {
    }
    %c0_2 = arith.constant 0 : index
    %c0_3 = arith.constant 0 : index
    %c0_4 = arith.constant 0 : index
    %c0_5 = arith.constant 0 : index
    %6 = vector.load %arg3[%c0_2, %c0_3, %c0_4, %c0_5] : memref<3x3x4x4xf32, #tpu.memory_space<vmem>>, vector<1x1x4x4xf32>
    %7 = vector.shape_cast %6 : vector<1x1x4x4xf32> to vector<4x4xf32>
    %c0_6 = arith.constant 0 : index
    %c0_7 = arith.constant 0 : index
    %c109 = arith.constant 109 : index
    %8 = vector.load %arg1[%c0_6, %c0_7, %c109] : memref<1x4x640xf32, #tpu.memory_space<vmem>>, vector<1x4x384xf32>
    %9 = vector.shape_cast %8 : vector<1x4x384xf32> to vector<4x384xf32>
    %cst_8 = arith.constant dense<0.000000e+00> : vector<4x384xf32>
    %10 = tpu.matmul %7, %9, %cst_8 {dimension_numbers = #tpu.dot_dimension_numbers<[1], [0], [0], [1], [0, 0, 1, 1], [], []>} : vector<4x4xf32>, vector<4x384xf32>, vector<4x384xf32> -> vector<4x384xf32>
    %c0_9 = arith.constant 0 : index
    %c1 = arith.constant 1 : index
    %c0_10 = arith.constant 0 : index
    %c0_11 = arith.constant 0 : index
    %11 = vector.load %arg3[%c0_9, %c1, %c0_10, %c0_11] : memref<3x3x4x4xf32, #tpu.memory_space<vmem>>, vector<1x1x4x4xf32>
    %12 = vector.shape_cast %11 : vector<1x1x4x4xf32> to vector<4x4xf32>
    %c0_12 = arith.constant 0 : index
    %c0_13 = arith.constant 0 : index
    %c110 = arith.constant 110 : index
    %13 = vector.load %arg1[%c0_12, %c0_13, %c110] : memref<1x4x640xf32, #tpu.memory_space<vmem>>, vector<1x4x384xf32>
    %14 = vector.shape_cast %13 : vector<1x4x384xf32> to vector<4x384xf32>
    %cst_14 = arith.constant dense<0.000000e+00> : vector<4x384xf32>
    %15 = tpu.matmul %12, %14, %cst_14 {dimension_numbers = #tpu.dot_dimension_numbers<[1], [0], [0], [1], [0, 0, 1, 1], [], []>} : vector<4x4xf32>, vector<4x384xf32>, vector<4x384xf32> -> vector<4x384xf32>
    %16 = arith.addf %10, %15 : vector<4x384xf32>
    %c0_15 = arith.constant 0 : index
    %c2 = arith.constant 2 : index
    %c0_16 = arith.constant 0 : index
    %c0_17 = arith.constant 0 : index
    %17 = vector.load %arg3[%c0_15, %c2, %c0_16, %c0_17] : memref<3x3x4x4xf32, #tpu.memory_space<vmem>>, vector<1x1x4x4xf32>
    %18 = vector.shape_cast %17 : vector<1x1x4x4xf32> to vector<4x4xf32>
    %c0_18 = arith.constant 0 : index
    %c0_19 = arith.constant 0 : index
    %c111 = arith.constant 111 : index
    %19 = vector.load %arg1[%c0_18, %c0_19, %c111] : memref<1x4x640xf32, #tpu.memory_space<vmem>>, vector<1x4x384xf32>
    %20 = vector.shape_cast %19 : vector<1x4x384xf32> to vector<4x384xf32>
    %cst_20 = arith.constant dense<0.000000e+00> : vector<4x384xf32>
    %21 = tpu.matmul %18, %20, %cst_20 {dimension_numbers = #tpu.dot_dimension_numbers<[1], [0], [0], [1], [0, 0, 1, 1], [], []>} : vector<4x4xf32>, vector<4x384xf32>, vector<4x384xf32> -> vector<4x384xf32>
    %22 = arith.addf %16, %21 : vector<4x384xf32>
    %c1_21 = arith.constant 1 : index
    %c0_22 = arith.constant 0 : index
    %c0_23 = arith.constant 0 : index
    %c0_24 = arith.constant 0 : index
    %23 = vector.load %arg3[%c1_21, %c0_22, %c0_23, %c0_24] : memref<3x3x4x4xf32, #tpu.memory_space<vmem>>, vector<1x1x4x4xf32>
    %24 = vector.shape_cast %23 : vector<1x1x4x4xf32> to vector<4x4xf32>
    %c0_25 = arith.constant 0 : index
    %c0_26 = arith.constant 0 : index
    %c127 = arith.constant 127 : index
    %25 = vector.load %arg1[%c0_25, %c0_26, %c127] : memref<1x4x640xf32, #tpu.memory_space<vmem>>, vector<1x4x384xf32>
    %26 = vector.shape_cast %25 : vector<1x4x384xf32> to vector<4x384xf32>
    %cst_27 = arith.constant dense<0.000000e+00> : vector<4x384xf32>
    %27 = tpu.matmul %24, %26, %cst_27 {dimension_numbers = #tpu.dot_dimension_numbers<[1], [0], [0], [1], [0, 0, 1, 1], [], []>} : vector<4x4xf32>, vector<4x384xf32>, vector<4x384xf32> -> vector<4x384xf32>
    %28 = arith.addf %22, %27 : vector<4x384xf32>
    %c1_28 = arith.constant 1 : index
    %c1_29 = arith.constant 1 : index
    %c0_30 = arith.constant 0 : index
    %c0_31 = arith.constant 0 : index
    %29 = vector.load %arg3[%c1_28, %c1_29, %c0_30, %c0_31] : memref<3x3x4x4xf32, #tpu.memory_space<vmem>>, vector<1x1x4x4xf32>
    %30 = vector.shape_cast %29 : vector<1x1x4x4xf32> to vector<4x4xf32>
    %c0_32 = arith.constant 0 : index
    %c0_33 = arith.constant 0 : index
    %c128 = arith.constant 128 : index
    %31 = vector.load %arg1[%c0_32, %c0_33, %c128] : memref<1x4x640xf32, #tpu.memory_space<vmem>>, vector<1x4x384xf32>
    %32 = vector.shape_cast %31 : vector<1x4x384xf32> to vector<4x384xf32>
    %cst_34 = arith.constant dense<0.000000e+00> : vector<4x384xf32>
    %33 = tpu.matmul %30, %32, %cst_34 {dimension_numbers = #tpu.dot_dimension_numbers<[1], [0], [0], [1], [0, 0, 1, 1], [], []>} : vector<4x4xf32>, vector<4x384xf32>, vector<4x384xf32> -> vector<4x384xf32>
    %34 = arith.addf %28, %33 : vector<4x384xf32>
    %c1_35 = arith.constant 1 : index
    %c2_36 = arith.constant 2 : index
    %c0_37 = arith.constant 0 : index
    %c0_38 = arith.constant 0 : index
    %35 = vector.load %arg3[%c1_35, %c2_36, %c0_37, %c0_38] : memref<3x3x4x4xf32, #tpu.memory_space<vmem>>, vector<1x1x4x4xf32>
    %36 = vector.shape_cast %35 : vector<1x1x4x4xf32> to vector<4x4xf32>
    %c0_39 = arith.constant 0 : index
    %c0_40 = arith.constant 0 : index
    %c129 = arith.constant 129 : index
    %37 = vector.load %arg1[%c0_39, %c0_40, %c129] : memref<1x4x640xf32, #tpu.memory_space<vmem>>, vector<1x4x384xf32>
    %38 = vector.shape_cast %37 : vector<1x4x384xf32> to vector<4x384xf32>
    %cst_41 = arith.constant dense<0.000000e+00> : vector<4x384xf32>
    %39 = tpu.matmul %36, %38, %cst_41 {dimension_numbers = #tpu.dot_dimension_numbers<[1], [0], [0], [1], [0, 0, 1, 1], [], []>} : vector<4x4xf32>, vector<4x384xf32>, vector<4x384xf32> -> vector<4x384xf32>
    %40 = arith.addf %34, %39 : vector<4x384xf32>
    %c2_42 = arith.constant 2 : index
    %c0_43 = arith.constant 0 : index
    %c0_44 = arith.constant 0 : index
    %c0_45 = arith.constant 0 : index
    %41 = vector.load %arg3[%c2_42, %c0_43, %c0_44, %c0_45] : memref<3x3x4x4xf32, #tpu.memory_space<vmem>>, vector<1x1x4x4xf32>
    %42 = vector.shape_cast %41 : vector<1x1x4x4xf32> to vector<4x4xf32>
    %c0_46 = arith.constant 0 : index
    %c0_47 = arith.constant 0 : index
    %c145 = arith.constant 145 : index
    %43 = vector.load %arg1[%c0_46, %c0_47, %c145] : memref<1x4x640xf32, #tpu.memory_space<vmem>>, vector<1x4x384xf32>
    %44 = vector.shape_cast %43 : vector<1x4x384xf32> to vector<4x384xf32>
    %cst_48 = arith.constant dense<0.000000e+00> : vector<4x384xf32>
    %45 = tpu.matmul %42, %44, %cst_48 {dimension_numbers = #tpu.dot_dimension_numbers<[1], [0], [0], [1], [0, 0, 1, 1], [], []>} : vector<4x4xf32>, vector<4x384xf32>, vector<4x384xf32> -> vector<4x384xf32>
    %46 = arith.addf %40, %45 : vector<4x384xf32>
    %c2_49 = arith.constant 2 : index
    %c1_50 = arith.constant 1 : index
    %c0_51 = arith.constant 0 : index
    %c0_52 = arith.constant 0 : index
    %47 = vector.load %arg3[%c2_49, %c1_50, %c0_51, %c0_52] : memref<3x3x4x4xf32, #tpu.memory_space<vmem>>, vector<1x1x4x4xf32>
    %48 = vector.shape_cast %47 : vector<1x1x4x4xf32> to vector<4x4xf32>
    %c0_53 = arith.constant 0 : index
    %c0_54 = arith.constant 0 : index
    %c146 = arith.constant 146 : index
    %49 = vector.load %arg1[%c0_53, %c0_54, %c146] : memref<1x4x640xf32, #tpu.memory_space<vmem>>, vector<1x4x384xf32>
    %50 = vector.shape_cast %49 : vector<1x4x384xf32> to vector<4x384xf32>
    %cst_55 = arith.constant dense<0.000000e+00> : vector<4x384xf32>
    %51 = tpu.matmul %48, %50, %cst_55 {dimension_numbers = #tpu.dot_dimension_numbers<[1], [0], [0], [1], [0, 0, 1, 1], [], []>} : vector<4x4xf32>, vector<4x384xf32>, vector<4x384xf32> -> vector<4x384xf32>
    %52 = arith.addf %46, %51 : vector<4x384xf32>
    %c2_56 = arith.constant 2 : index
    %c2_57 = arith.constant 2 : index
    %c0_58 = arith.constant 0 : index
    %c0_59 = arith.constant 0 : index
    %53 = vector.load %arg3[%c2_56, %c2_57, %c0_58, %c0_59] : memref<3x3x4x4xf32, #tpu.memory_space<vmem>>, vector<1x1x4x4xf32>
    %54 = vector.shape_cast %53 : vector<1x1x4x4xf32> to vector<4x4xf32>
    %c0_60 = arith.constant 0 : index
    %c0_61 = arith.constant 0 : index
    %c147 = arith.constant 147 : index
    %55 = vector.load %arg1[%c0_60, %c0_61, %c147] : memref<1x4x640xf32, #tpu.memory_space<vmem>>, vector<1x4x384xf32>
    %56 = vector.shape_cast %55 : vector<1x4x384xf32> to vector<4x384xf32>
    %cst_62 = arith.constant dense<0.000000e+00> : vector<4x384xf32>
    %57 = tpu.matmul %54, %56, %cst_62 {dimension_numbers = #tpu.dot_dimension_numbers<[1], [0], [0], [1], [0, 0, 1, 1], [], []>} : vector<4x4xf32>, vector<4x384xf32>, vector<4x384xf32> -> vector<4x384xf32>
    %58 = arith.addf %52, %57 : vector<4x384xf32>
    %cst_63 = arith.constant 0.000000e+00 : f32
    %59 = vector.shape_cast %2 : vector<1x384xi1> to vector<1x384xi1>
    %60 = vector.broadcast %59 : vector<1x384xi1> to vector<4x384xi1>
    %61 = vector.broadcast %cst_63 : f32 to vector<4x384xf32>
    %62 = arith.select %60, %58, %61 : vector<4x384xi1>, vector<4x384xf32>
    %cst_64 = arith.constant dense<0.000000e+00> : vector<4xf32>
    %63 = vector.multi_reduction <add>, %62, %cst_64 [1] : vector<4x384xf32> to vector<4xf32>
    %64 = vector.shape_cast %63 : vector<4xf32> to vector<4x1xf32>
    %cst_65 = arith.constant 3.906250e-03 : f32
    %65 = vector.broadcast %cst_65 : f32 to vector<4x1xf32>
    %66 = arith.mulf %64, %65 : vector<4x1xf32>
    %67 = arith.mulf %62, %62 : vector<4x384xf32>
    %cst_66 = arith.constant dense<0.000000e+00> : vector<4xf32>
    %68 = vector.multi_reduction <add>, %67, %cst_66 [1] : vector<4x384xf32> to vector<4xf32>
    %69 = vector.shape_cast %68 : vector<4xf32> to vector<4x1xf32>
    %cst_67 = arith.constant 3.906250e-03 : f32
    %70 = vector.broadcast %cst_67 : f32 to vector<4x1xf32>
    %71 = arith.mulf %69, %70 : vector<4x1xf32>
    %72 = arith.mulf %66, %66 : vector<4x1xf32>
    %73 = arith.subf %71, %72 : vector<4x1xf32>
    %74 = vector.broadcast %66 : vector<4x1xf32> to vector<4x384xf32>
    %75 = arith.subf %58, %74 : vector<4x384xf32>
    %cst_68 = arith.constant 9.99999974E-6 : f32
    %76 = vector.broadcast %cst_68 : f32 to vector<4x1xf32>
    %77 = arith.addf %73, %76 : vector<4x1xf32>
    %78 = math.rsqrt %77 : vector<4x1xf32>
    %79 = vector.broadcast %78 : vector<4x1xf32> to vector<4x384xf32>
    %80 = arith.mulf %75, %79 : vector<4x384xf32>
    %c0_69 = arith.constant 0 : index
    %c0_70 = arith.constant 0 : index
    %81 = vector.load %arg4[%c0_69, %c0_70] : memref<4x1xf32, #tpu.memory_space<vmem>>, vector<4x1xf32>
    %82 = vector.broadcast %81 : vector<4x1xf32> to vector<4x384xf32>
    %83 = arith.mulf %80, %82 : vector<4x384xf32>
    %c0_71 = arith.constant 0 : index
    %c0_72 = arith.constant 0 : index
    %84 = vector.load %arg5[%c0_71, %c0_72] : memref<4x1xf32, #tpu.memory_space<vmem>>, vector<4x1xf32>
    %85 = vector.broadcast %84 : vector<4x1xf32> to vector<4x384xf32>
    %86 = arith.addf %83, %85 : vector<4x384xf32>
    %cst_73 = arith.constant 0.000000e+00 : f32
    %87 = vector.broadcast %cst_73 : f32 to vector<4x384xf32>
    %88 = arith.maximumf %86, %87 : vector<4x384xf32>
    %89 = vector.broadcast %0 : vector<1x384xf32> to vector<4x384xf32>
    %90 = arith.mulf %88, %89 : vector<4x384xf32>
    %c0_74 = arith.constant 0 : index
    %c128_75 = arith.constant 128 : index
    %91 = vector.load %arg10[%c0_74, %c128_75] : memref<4x640xf32, #tpu.memory_space<vmem>>, vector<4x384xf32>
    tpu.vector_store %arg10[%c0_74, %c128_75], %90 {strides = array<i32>} : memref<4x640xf32, #tpu.memory_space<vmem>>, vector<4x384xf32>,
    %c0_76 = arith.constant 0 : index
    %c0_77 = arith.constant 0 : index
    %c0_78 = arith.constant 0 : index
    %c0_79 = arith.constant 0 : index
    %92 = vector.load %arg6[%c0_76, %c0_77, %c0_78, %c0_79] : memref<3x3x4x4xf32, #tpu.memory_space<vmem>>, vector<1x1x4x4xf32>
    %93 = vector.shape_cast %92 : vector<1x1x4x4xf32> to vector<4x4xf32>
    %c0_80 = arith.constant 0 : index
    %c109_81 = arith.constant 109 : index
    %94 = vector.load %arg10[%c0_80, %c109_81] : memref<4x640xf32, #tpu.memory_space<vmem>>, vector<4x384xf32>
    %cst_82 = arith.constant dense<0.000000e+00> : vector<4x384xf32>
    %95 = tpu.matmul %93, %94, %cst_82 {dimension_numbers = #tpu.dot_dimension_numbers<[1], [0], [0], [1], [0, 0, 1, 1], [], []>} : vector<4x4xf32>, vector<4x384xf32>, vector<4x384xf32> -> vector<4x384xf32>
    %c0_83 = arith.constant 0 : index
    %c1_84 = arith.constant 1 : index
    %c0_85 = arith.constant 0 : index
    %c0_86 = arith.constant 0 : index
    %96 = vector.load %arg6[%c0_83, %c1_84, %c0_85, %c0_86] : memref<3x3x4x4xf32, #tpu.memory_space<vmem>>, vector<1x1x4x4xf32>
    %97 = vector.shape_cast %96 : vector<1x1x4x4xf32> to vector<4x4xf32>
    %c0_87 = arith.constant 0 : index
    %c110_88 = arith.constant 110 : index
    %98 = vector.load %arg10[%c0_87, %c110_88] : memref<4x640xf32, #tpu.memory_space<vmem>>, vector<4x384xf32>
    %cst_89 = arith.constant dense<0.000000e+00> : vector<4x384xf32>
    %99 = tpu.matmul %97, %98, %cst_89 {dimension_numbers = #tpu.dot_dimension_numbers<[1], [0], [0], [1], [0, 0, 1, 1], [], []>} : vector<4x4xf32>, vector<4x384xf32>, vector<4x384xf32> -> vector<4x384xf32>
    %100 = arith.addf %95, %99 : vector<4x384xf32>
    %c0_90 = arith.constant 0 : index
    %c2_91 = arith.constant 2 : index
    %c0_92 = arith.constant 0 : index
    %c0_93 = arith.constant 0 : index
    %101 = vector.load %arg6[%c0_90, %c2_91, %c0_92, %c0_93] : memref<3x3x4x4xf32, #tpu.memory_space<vmem>>, vector<1x1x4x4xf32>
    %102 = vector.shape_cast %101 : vector<1x1x4x4xf32> to vector<4x4xf32>
    %c0_94 = arith.constant 0 : index
    %c111_95 = arith.constant 111 : index
    %103 = vector.load %arg10[%c0_94, %c111_95] : memref<4x640xf32, #tpu.memory_space<vmem>>, vector<4x384xf32>
    %cst_96 = arith.constant dense<0.000000e+00> : vector<4x384xf32>
    %104 = tpu.matmul %102, %103, %cst_96 {dimension_numbers = #tpu.dot_dimension_numbers<[1], [0], [0], [1], [0, 0, 1, 1], [], []>} : vector<4x4xf32>, vector<4x384xf32>, vector<4x384xf32> -> vector<4x384xf32>
    %105 = arith.addf %100, %104 : vector<4x384xf32>
    %c1_97 = arith.constant 1 : index
    %c0_98 = arith.constant 0 : index
    %c0_99 = arith.constant 0 : index
    %c0_100 = arith.constant 0 : index
    %106 = vector.load %arg6[%c1_97, %c0_98, %c0_99, %c0_100] : memref<3x3x4x4xf32, #tpu.memory_space<vmem>>, vector<1x1x4x4xf32>
    %107 = vector.shape_cast %106 : vector<1x1x4x4xf32> to vector<4x4xf32>
    %c0_101 = arith.constant 0 : index
    %c127_102 = arith.constant 127 : index
    %108 = vector.load %arg10[%c0_101, %c127_102] : memref<4x640xf32, #tpu.memory_space<vmem>>, vector<4x384xf32>
    %cst_103 = arith.constant dense<0.000000e+00> : vector<4x384xf32>
    %109 = tpu.matmul %107, %108, %cst_103 {dimension_numbers = #tpu.dot_dimension_numbers<[1], [0], [0], [1], [0, 0, 1, 1], [], []>} : vector<4x4xf32>, vector<4x384xf32>, vector<4x384xf32> -> vector<4x384xf32>
    %110 = arith.addf %105, %109 : vector<4x384xf32>
    %c1_104 = arith.constant 1 : index
    %c1_105 = arith.constant 1 : index
    %c0_106 = arith.constant 0 : index
    %c0_107 = arith.constant 0 : index
    %111 = vector.load %arg6[%c1_104, %c1_105, %c0_106, %c0_107] : memref<3x3x4x4xf32, #tpu.memory_space<vmem>>, vector<1x1x4x4xf32>
    %112 = vector.shape_cast %111 : vector<1x1x4x4xf32> to vector<4x4xf32>
    %c0_108 = arith.constant 0 : index
    %c128_109 = arith.constant 128 : index
    %113 = vector.load %arg10[%c0_108, %c128_109] : memref<4x640xf32, #tpu.memory_space<vmem>>, vector<4x384xf32>
    %cst_110 = arith.constant dense<0.000000e+00> : vector<4x384xf32>
    %114 = tpu.matmul %112, %113, %cst_110 {dimension_numbers = #tpu.dot_dimension_numbers<[1], [0], [0], [1], [0, 0, 1, 1], [], []>} : vector<4x4xf32>, vector<4x384xf32>, vector<4x384xf32> -> vector<4x384xf32>
    %115 = arith.addf %110, %114 : vector<4x384xf32>
    %c1_111 = arith.constant 1 : index
    %c2_112 = arith.constant 2 : index
    %c0_113 = arith.constant 0 : index
    %c0_114 = arith.constant 0 : index
    %116 = vector.load %arg6[%c1_111, %c2_112, %c0_113, %c0_114] : memref<3x3x4x4xf32, #tpu.memory_space<vmem>>, vector<1x1x4x4xf32>
    %117 = vector.shape_cast %116 : vector<1x1x4x4xf32> to vector<4x4xf32>
    %c0_115 = arith.constant 0 : index
    %c129_116 = arith.constant 129 : index
    %118 = vector.load %arg10[%c0_115, %c129_116] : memref<4x640xf32, #tpu.memory_space<vmem>>, vector<4x384xf32>
    %cst_117 = arith.constant dense<0.000000e+00> : vector<4x384xf32>
    %119 = tpu.matmul %117, %118, %cst_117 {dimension_numbers = #tpu.dot_dimension_numbers<[1], [0], [0], [1], [0, 0, 1, 1], [], []>} : vector<4x4xf32>, vector<4x384xf32>, vector<4x384xf32> -> vector<4x384xf32>
    %120 = arith.addf %115, %119 : vector<4x384xf32>
    %c2_118 = arith.constant 2 : index
    %c0_119 = arith.constant 0 : index
    %c0_120 = arith.constant 0 : index
    %c0_121 = arith.constant 0 : index
    %121 = vector.load %arg6[%c2_118, %c0_119, %c0_120, %c0_121] : memref<3x3x4x4xf32, #tpu.memory_space<vmem>>, vector<1x1x4x4xf32>
    %122 = vector.shape_cast %121 : vector<1x1x4x4xf32> to vector<4x4xf32>
    %c0_122 = arith.constant 0 : index
    %c145_123 = arith.constant 145 : index
    %123 = vector.load %arg10[%c0_122, %c145_123] : memref<4x640xf32, #tpu.memory_space<vmem>>, vector<4x384xf32>
    %cst_124 = arith.constant dense<0.000000e+00> : vector<4x384xf32>
    %124 = tpu.matmul %122, %123, %cst_124 {dimension_numbers = #tpu.dot_dimension_numbers<[1], [0], [0], [1], [0, 0, 1, 1], [], []>} : vector<4x4xf32>, vector<4x384xf32>, vector<4x384xf32> -> vector<4x384xf32>
    %125 = arith.addf %120, %124 : vector<4x384xf32>
    %c2_125 = arith.constant 2 : index
    %c1_126 = arith.constant 1 : index
    %c0_127 = arith.constant 0 : index
    %c0_128 = arith.constant 0 : index
    %126 = vector.load %arg6[%c2_125, %c1_126, %c0_127, %c0_128] : memref<3x3x4x4xf32, #tpu.memory_space<vmem>>, vector<1x1x4x4xf32>
    %127 = vector.shape_cast %126 : vector<1x1x4x4xf32> to vector<4x4xf32>
    %c0_129 = arith.constant 0 : index
    %c146_130 = arith.constant 146 : index
    %128 = vector.load %arg10[%c0_129, %c146_130] : memref<4x640xf32, #tpu.memory_space<vmem>>, vector<4x384xf32>
    %cst_131 = arith.constant dense<0.000000e+00> : vector<4x384xf32>
    %129 = tpu.matmul %127, %128, %cst_131 {dimension_numbers = #tpu.dot_dimension_numbers<[1], [0], [0], [1], [0, 0, 1, 1], [], []>} : vector<4x4xf32>, vector<4x384xf32>, vector<4x384xf32> -> vector<4x384xf32>
    %130 = arith.addf %125, %129 : vector<4x384xf32>
    %c2_132 = arith.constant 2 : index
    %c2_133 = arith.constant 2 : index
    %c0_134 = arith.constant 0 : index
    %c0_135 = arith.constant 0 : index
    %131 = vector.load %arg6[%c2_132, %c2_133, %c0_134, %c0_135] : memref<3x3x4x4xf32, #tpu.memory_space<vmem>>, vector<1x1x4x4xf32>
    %132 = vector.shape_cast %131 : vector<1x1x4x4xf32> to vector<4x4xf32>
    %c0_136 = arith.constant 0 : index
    %c147_137 = arith.constant 147 : index
    %133 = vector.load %arg10[%c0_136, %c147_137] : memref<4x640xf32, #tpu.memory_space<vmem>>, vector<4x384xf32>
    %cst_138 = arith.constant dense<0.000000e+00> : vector<4x384xf32>
    %134 = tpu.matmul %132, %133, %cst_138 {dimension_numbers = #tpu.dot_dimension_numbers<[1], [0], [0], [1], [0, 0, 1, 1], [], []>} : vector<4x4xf32>, vector<4x384xf32>, vector<4x384xf32> -> vector<4x384xf32>
    %135 = arith.addf %130, %134 : vector<4x384xf32>
    %cst_139 = arith.constant 0.000000e+00 : f32
    %136 = vector.shape_cast %2 : vector<1x384xi1> to vector<1x384xi1>
    %137 = vector.broadcast %136 : vector<1x384xi1> to vector<4x384xi1>
    %138 = vector.broadcast %cst_139 : f32 to vector<4x384xf32>
    %139 = arith.select %137, %135, %138 : vector<4x384xi1>, vector<4x384xf32>
    %cst_140 = arith.constant dense<0.000000e+00> : vector<4xf32>
    %140 = vector.multi_reduction <add>, %139, %cst_140 [1] : vector<4x384xf32> to vector<4xf32>
    %141 = vector.shape_cast %140 : vector<4xf32> to vector<4x1xf32>
    %cst_141 = arith.constant 3.906250e-03 : f32
    %142 = vector.broadcast %cst_141 : f32 to vector<4x1xf32>
    %143 = arith.mulf %141, %142 : vector<4x1xf32>
    %144 = arith.mulf %139, %139 : vector<4x384xf32>
    %cst_142 = arith.constant dense<0.000000e+00> : vector<4xf32>
    %145 = vector.multi_reduction <add>, %144, %cst_142 [1] : vector<4x384xf32> to vector<4xf32>
    %146 = vector.shape_cast %145 : vector<4xf32> to vector<4x1xf32>
    %cst_143 = arith.constant 3.906250e-03 : f32
    %147 = vector.broadcast %cst_143 : f32 to vector<4x1xf32>
    %148 = arith.mulf %146, %147 : vector<4x1xf32>
    %149 = arith.mulf %143, %143 : vector<4x1xf32>
    %150 = arith.subf %148, %149 : vector<4x1xf32>
    %151 = vector.broadcast %143 : vector<4x1xf32> to vector<4x384xf32>
    %152 = arith.subf %135, %151 : vector<4x384xf32>
    %cst_144 = arith.constant 9.99999974E-6 : f32
    %153 = vector.broadcast %cst_144 : f32 to vector<4x1xf32>
    %154 = arith.addf %150, %153 : vector<4x1xf32>
    %155 = math.rsqrt %154 : vector<4x1xf32>
    %156 = vector.broadcast %155 : vector<4x1xf32> to vector<4x384xf32>
    %157 = arith.mulf %152, %156 : vector<4x384xf32>
    %c0_145 = arith.constant 0 : index
    %c0_146 = arith.constant 0 : index
    %158 = vector.load %arg7[%c0_145, %c0_146] : memref<4x1xf32, #tpu.memory_space<vmem>>, vector<4x1xf32>
    %159 = vector.broadcast %158 : vector<4x1xf32> to vector<4x384xf32>
    %160 = arith.mulf %157, %159 : vector<4x384xf32>
    %c0_147 = arith.constant 0 : index
    %c0_148 = arith.constant 0 : index
    %161 = vector.load %arg8[%c0_147, %c0_148] : memref<4x1xf32, #tpu.memory_space<vmem>>, vector<4x1xf32>
    %162 = vector.broadcast %161 : vector<4x1xf32> to vector<4x384xf32>
    %163 = arith.addf %160, %162 : vector<4x384xf32>
    %c0_149 = arith.constant 0 : index
    %c0_150 = arith.constant 0 : index
    %c128_151 = arith.constant 128 : index
    %164 = vector.load %arg1[%c0_149, %c0_150, %c128_151] : memref<1x4x640xf32, #tpu.memory_space<vmem>>, vector<1x4x384xf32>
    %165 = vector.shape_cast %164 : vector<1x4x384xf32> to vector<4x384xf32>
    %166 = arith.addf %165, %163 : vector<4x384xf32>
    %c0_152 = arith.constant 0 : index
    %c0_153 = arith.constant 0 : index
    %c0_154 = arith.constant 0 : index
    %167 = vector.load %arg9[%c0_152, %c0_153, %c0_154] : memref<1x4x384xf32, #tpu.memory_space<vmem>>, vector<1x4x384xf32>
    %168 = vector.shape_cast %167 : vector<1x4x384xf32> to vector<4x384xf32>
    %169 = vector.shape_cast %166 : vector<4x384xf32> to vector<1x4x384xf32>
    tpu.vector_store %arg9[%c0_152, %c0_153, %c0_154], %169 {strides = array<i32>} : memref<1x4x384xf32, #tpu.memory_space<vmem>>, vector<1x4x384xf32>,
    return
  }
  func.func @transform_0(%arg0: i32) -> (i32, i32, i32) {
    %c0_i32 = arith.constant 0 : i32
    %c0_i32_0 = arith.constant 0 : i32
    %c0_i32_1 = arith.constant 0 : i32
    return %arg0, %c0_i32, %c0_i32_0 : i32, i32, i32
  }
  func.func @transform_1(%arg0: i32) -> (i32, i32) {
    %c0_i32 = arith.constant 0 : i32
    %c0_i32_0 = arith.constant 0 : i32
    %c0_i32_1 = arith.constant 0 : i32
    return %c0_i32, %c0_i32_0 : i32, i32
  }
  func.func @transform_2(%arg0: i32) -> (i32, i32, i32, i32) {
    %c0_i32 = arith.constant 0 : i32
    %c0_i32_0 = arith.constant 0 : i32
    %c0_i32_1 = arith.constant 0 : i32
    %c0_i32_2 = arith.constant 0 : i32
    %c0_i32_3 = arith.constant 0 : i32
    return %c0_i32, %c0_i32_0, %c0_i32_1, %c0_i32_2 : i32, i32, i32, i32
  }
  func.func @transform_3(%arg0: i32) -> (i32, i32) {
    %c0_i32 = arith.constant 0 : i32
    %c0_i32_0 = arith.constant 0 : i32
    %c0_i32_1 = arith.constant 0 : i32
    return %c0_i32, %c0_i32_0 : i32, i32
  }
  func.func @transform_4(%arg0: i32) -> (i32, i32) {
    %c0_i32 = arith.constant 0 : i32
    %c0_i32_0 = arith.constant 0 : i32
    %c0_i32_1 = arith.constant 0 : i32
    return %c0_i32, %c0_i32_0 : i32, i32
  }
  func.func @transform_5(%arg0: i32) -> (i32, i32, i32, i32) {
    %c0_i32 = arith.constant 0 : i32
    %c0_i32_0 = arith.constant 0 : i32
    %c0_i32_1 = arith.constant 0 : i32
    %c0_i32_2 = arith.constant 0 : i32
    %c0_i32_3 = arith.constant 0 : i32
    return %c0_i32, %c0_i32_0, %c0_i32_1, %c0_i32_2 : i32, i32, i32, i32
  }
  func.func @transform_6(%arg0: i32) -> (i32, i32) {
    %c0_i32 = arith.constant 0 : i32
    %c0_i32_0 = arith.constant 0 : i32
    %c0_i32_1 = arith.constant 0 : i32
    return %c0_i32, %c0_i32_0 : i32, i32
  }
  func.func @transform_7(%arg0: i32) -> (i32, i32) {
    %c0_i32 = arith.constant 0 : i32
    %c0_i32_0 = arith.constant 0 : i32
    %c0_i32_1 = arith.constant 0 : i32
    return %c0_i32, %c0_i32_0 : i32, i32
  }
  func.func @transform_8(%arg0: i32) -> (i32, i32, i32) {
    %c0_i32 = arith.constant 0 : i32
    %c0_i32_0 = arith.constant 0 : i32
    %c0_i32_1 = arith.constant 0 : i32
    return %arg0, %c0_i32, %c0_i32_0 : i32, i32, i32
  }
}

</mosaic_0001>

<bundles_post_ra>
// kernel: tpu_custom_call.1
= control target key start
LH: loop header
LB: loop body
LE: loop exit
PB: predicated region body
PF: predicated region fallthrough
CT: control target
= control target key end

     0   :  { %s3215_s0 = inlined_call_operand.hbm [shape: f32[2,4,640], index: 0, kind: input, shape index: {}]   ;;  %s3216_s1 = inlined_call_operand.vmem [shape: f32[1,384], index: 1, kind: input, shape index: {}]   ;;  %s3217_s2 = inlined_call_operand.hbm [shape: f32[3,3,4,4], index: 2, kind: input, shape index: {}]   ;;  %s3218_s3 = inlined_call_operand.vmem [shape: f32[4,1], index: 3, kind: input, shape index: {}]   ;;  %s3219_s4 = inlined_call_operand.vmem [shape: f32[4,1], index: 4, kind: input, shape index: {}]   ;;  %s3220_s5 = inlined_call_operand.hbm [shape: f32[3,3,4,4], index: 5, kind: input, shape index: {}]   ;;  %s3221_s6 = inlined_call_operand.vmem [shape: f32[4,1], index: 6, kind: input, shape index: {}]   ;;  %s3222_s7 = inlined_call_operand.vmem [shape: f32[4,1], index: 7, kind: input, shape index: {}]   ;;  %s3223_s8 = inlined_call_operand.hbm [shape: f32[2,4,384], index: 8, kind: output, shape index: {}]  }
   0x1   :  { %3225 = sst [smem:[#allocation15_spill]] %s3217_s2 }
   0x2   :  { %3226 = sst [smem:[#allocation16_spill]] %s3220_s5 }
   0x3   :  { %13 = vsyncpa [#allocation4], 0 }
   0x4   :  { %15 = vsyncpa [#allocation4 + $0x1], 0 }
   0x5   :  { %16 = vsyncpa [#allocation7], 0 }
   0x6   :  { %17 = vsyncpa [#allocation5], 0 }
   0x7   :  { %19 = vsyncpa [#allocation5 + $0x1], 0  ;;  %s2751_s27 = smov 0   ;;  %s2753_s28 = smov 0  }
   0x8   :  { %s2755_s29 = smov 0   ;;  %s2757_s30 = smov 0  }
   0x9 LB: > { %3227 = sst [smem:[#allocation13_spill]] %s2686_s29  ;;  %s2775_s12 = sadd.s32 4294967295, %s2690_s30   ;;  %s2690_s30 = sphi %s2757_s30, %s3248_s30   ;;  %s2686_s29 = sphi %s2755_s29, %s3245_s29   ;;  %s2682_s28 = sphi %s2753_s28, %s3247_s28   ;;  %s2678_s27 = sphi %s2751_s27, %s3246_s27  }
   0xa   : > { %s3228_s2 = sld [smem:[#allocation15_spill]]  ;;  %p2320_p0 = scmp.ge.s32.totalorder %s2690_s30, 1 }
   0xb   : > { %p46_p1 = scmp.eq.s32.totalorder %s2775_s12, 0  ;;  %p229_p2 = scmp.lt.s32.totalorder %s2690_s30, 3 }
   0xc   : > { %s2692_s14 = smov [#allocation6]   ;;  %s3230_s5 = sld [smem:[#allocation16_spill]] }
   0xd   : > { %p2781_p4 = pnand %p2320_p0, %p229_p2  ;;  %s245_s15 = sshll.u32 %s2692_s14, 4  ;;  %s246_s15 = int_to_ptr.vmem [resolvable:$true] %s245_s15 }
   0xe   : > { %s2693_s19 = smov [#allocation8]   ;;  %s2694_s21 = smov 64  }
   0xf   : > { %p2457_p5 = pneg %p2781_p4  ;;  %s265_s20 = sshll.u32 %s2693_s19, 4  ;;  %s266_s20 = int_to_ptr.vmem [resolvable:$true] %s265_s20 }
  0x10   : > { %s243_s11 = sshll.u32 %s3228_s2, 4  ;;  %s2695_s22 = smov 4   ;;  %s244_s11 = int_to_ptr.hbm [resolvable:$true] %s243_s11 }
  0x11   : > { %p2458_p7 = pnand %p2457_p5, %p46_p1  ;;  %s2319_s23 = sadd.s32 4294967294, %s2690_s30  }
  0x12   : > { %s263_s18 = sshll.u32 %s3230_s5, 4  ;;  %s2795_s24 = sadd.s32 1, %s2690_s30   ;;  %s264_s18 = int_to_ptr.hbm [resolvable:$true] %s263_s18 }
  0x13   : > { %2460 = dma.hbm_to_vmem [thread:$0]  (!%p2458_p7), %s244_s11, 576, %s246_s15, [#allocation7], %s2694_s21, %s2694_s21, %s2695_s22  }
  0x14   : > { %2463 = dma.hbm_to_vmem [thread:$0]  (!%p2458_p7), %s264_s18, 576, %s266_s20, [#allocation7], %s2694_s21, %s2694_s21, %s2695_s22  }
  0x15   : > { %s29_s25 = ssub.s32 %s2690_s30, %s2795_s24  ;;  %s32_s26 = sadd.s32 1, %s2686_s29 }
  0x16   : > { %p30_p8 = scmp.eq.s32.totalorder %s29_s25, 0  ;;  %p39_p9 = scmp.ne.s32.totalorder %s2686_s29, %s2682_s28 }
  0x17   : > { %p40_p10 = scmp.eq.s32.totalorder %s2690_s30, 0  ;;  %p45_p11 = scmp.ne.s32.totalorder %s2682_s28, %s2678_s27 }
  0x18   : > { %s2806_s9 = scalar_select %p30_p8, %s2686_s29, %s32_s26  }
  0x19   : > { %p41_p12 = por %p40_p10, %p39_p9  ;;  %p2810_p13 = por %p46_p1, %p45_p11 }
  0x1a   : > { %3231 = sst [smem:[#allocation14_spill]] %s2806_s9  ;;  %p216_p0 = scmp.eq.s32.totalorder %s2775_s12, 1 }
  0x1b   : > { %p222_p2 = scmp.eq.s32.totalorder %s2319_s23, 1  ;;  %p2474_p5 = scmp.lt.s32.totalorder %s2690_s30, 2 }
  0x1c   : > { %s285_s11 = sand.u32 1, %s2686_s29   ;;  %p2817_p7 = por %p216_p0, %p39_p9 }
  0x1d   : > { %p2821_p6 = por %p222_p2, %p45_p11  ;;  %s2440_s16 = smul.u32 20, %s285_s11 }
  0x1e   : > { %s2441_s17 = smul.u32 20, %s2690_s30  ;;  %p2826_p8 = pnand %p2474_p5, %p41_p12 }
  0x1f   : > { %s289_s22 = scalar_lea.vmem [#allocation3], %s2440_s16  ;;  %s286_s26 = scalar_lea.sflag [#allocation4], %s285_s11 }
  0x20   : > { %s294_s21 = scalar_lea.hbm %s3215_s0, %s2441_s17  ;;  %s298_s23 = sshll.u32 %s289_s22, 4  ;;  %s299_s23 = int_to_ptr.vmem [resolvable:$true] %s298_s23 }
  0x21   : > { %s296_s25 = sshll.u32 %s294_s21, 4  ;;  %p2594_p10 = pneg %p2826_p8  ;;  %s297_s25 = int_to_ptr.hbm [resolvable:$true] %s296_s25 }
  0x22   : > { %s2590_s2 = sshra.s32 %s297_s25, 4  ;;  %s2597_s19 = scalar_lea.hbm %s3215_s0, 40  ;;  %s2591_s2 = int_to_ptr.hbm [resolvable:$true] %s2590_s2 }
  0x23   : > { %s2592_s5 = scalar_lea.hbm %s2591_s2, 20  ;;  %p2598_p0 = scmp.lt.s32.totalorder %s2591_s2, %s3215_s0 }
  0x24   : > { %p2593_p9 = scmp.ne.s32.totalorder %s2591_s2, %s2592_s5  ;;  %p2599_p2 = scmp.lt.s32.totalorder %s2597_s19, %s2592_s5 }
  0x26   : > { %p2595_p11 = pnand %p2594_p10, %p2593_p9  ;;  %p2600_p5 = por %p2599_p2, %p2598_p0 }
  0x28   : > { %p2596_p12 = pneg %p2595_p11 }
  0x2a   : > { %p2601_p3 = pnand %p2600_p5, %p2596_p12 }
  0x2c   : > { %2604 = shalt.err (!%p2601_p3)
}
  0x2d   : > { %2467 = dma.hbm_to_vmem [thread:$0]  (!%p2826_p8), %s297_s25, 320, %s299_s23, %s286_s26  }
  0x2e   : > { %307 = sbr.rel (%p2781_p4) target bundleno = 1086 (0x43e), region = 52  ;;  %s2846_s11 = sand.u32 (!%p2781_p4), 1, %s2682_s28  }
  0x2f   : > { %s2442_s29 = smul.u32 (!%p2781_p4), 20, %s2846_s11  ;;  %s310_s9 = scalar_lea.sflag (!%p2781_p4), [#allocation4], %s2846_s11 }
  0x31   : > { %s2850_s16 = scalar_lea.vmem (!%p2781_p4), [#allocation3], %s2442_s29 }
  0x33   : > { %2665 = dma.done.wait (%p2810_p13), %s310_s9, 320  }
  0x34   : > { %2667 = vsyncadd (%p2810_p13), %s310_s9, 4294966976 }
  0x35   : > { %2669 = dma.done.wait (%p46_p1), [#allocation7], 1152  }
  0x36   : > { %2671 = vsyncadd (%p46_p1), [#allocation7], 4294966144  ;;  %s2443_s2 = smul.u32 12, %s2846_s11  ;;  %v2864_v0 = vld [vmem:[%s3216_s1] sm:$0x7]  ;;  %p3236_p3 = scmp.ne.s32.totalorder %s2775_s12, 0 }
  0x37   : > { %vm358_vm0 = vcmp.gt.f32.partialorder %v2864_v0, 0.0 }
  0x38   : > { %s2867_s18 = scalar_lea.vmem [#allocation9], %s2443_s2  ;;  %362 = sbr.rel (%p3236_p3) target bundleno = 64 (0x40), region = 68 }
  0x3d   : > { %v2696_v1 = vmov 0.0  }
  0x3e   : > { %363 = vst [vmem:[#allocation2] sm:$0xf] %v2696_v1 }
  0x3f   : > { %364 = vst [vmem:[#allocation2 + $0x10] sm:$0xf] %v2696_v1 }
  0x40 PF: > { %v367_v2 = vld [vmem:[%s2850_s16 + $0x8] sm:$0xff]  ;;  %v366_v3 = vld [vmem:[%s2850_s16] sm:$0xff]  ;;  %s2697_s10 = smov 18   ;;  %s2698_s21 = smov 19   ;;  %vm477_vm1 = vcmask 154624   ;;  %vm395_vm2 = vcmask 1043456  }
  0x41   : > { %374 = vst [vmem:[#allocation1 + $0x10] ss:$2 sm:$0xff] %v367_v2  ;;  %s2699_s22 = smov 17   ;;  %v747_v16 = vld [vmem:[%s2850_s16 + $0xc] sm:$0xf]  ;;  %v746_v17 = vld [vmem:[%s2850_s16 + $0x4] sm:$0xff] }
  0x42   : > { %372 = vst [vmem:[#allocation1] ss:$2 sm:$0xff] %v366_v3  ;;  %v831_v22 = vld [vmem:[%s2850_s16 + $0xc] sm:$0xff]  ;;  %s2700_s23 = smov 1   ;;  %s2701_s25 = smov 127   ;;  %vm391_vm3 = vcmask 31744  }
  0x43   : > { %s2702_s26 = smov 111   ;;  %s2703_s19 = smov 110   ;;  %v365_v44 = vld [vmem:[#allocation6] sm:$0xf]  ;;  %vm387_vm4 = vcmask 146432   ;;  %vm668_vm5 = vcmask 7168  }
  0x44   : > { %s2704_s20 = smov 109   ;;  %v369_v53 = vld [vmem:[#allocation6 + $0x4] sm:$0xf]  ;;  %vm571_vm6 = vcmask 138240   ;;  %v551_v63 = vld [vmem:[#allocation6 + $0x8] sm:$0xf] }
  0x45   : > { %vm849_vm7 = vcmask 1039360   ;;  %vm1043_vm8 = vcmask 900096   ;;  %vm946_vm9 = vcmask 908288   ;;  %vm1140_vm10 = vcmask 891904   ;;  %s2640_s2 = scalar_lea.hbm %s3223_s8, 24 }
  0x48   : > { %v377_v4 = vld.sshfl [vmem:[#allocation1 + $0x10] sm:$0xff pattern:$0x75316420]  ;;  %v378_v5 = vld.sshfl [vmem:[#allocation1 + $0x18] sm:$0xff pattern:$0x75316420] }
  0x49   : > { %383 = vrot.lane.b32.xlu0 %v377_v4, %s2697_s10  ;;  %v375_v6 = vld.sshfl [vmem:[#allocation1] sm:$0xff pattern:$0x75316420]  ;;  %464 = vst [vmem:[#allocation1 + $0x10] ss:$2 sm:$0xff] %v367_v2 }
  0x4a   : > { %379 = vrot.lane.b32.xlu1 %v375_v6, %s2697_s10  ;;  %v376_v7 = vld.sshfl [vmem:[#allocation1 + $0x8] sm:$0xff pattern:$0x75316420] }
  0x4b   : > { %462 = vst [vmem:[#allocation1] ss:$2 sm:$0xff] %v366_v3 }
  0x50   : > { %v468_v8 = vld.sshfl [vmem:[#allocation1 + $0x18] sm:$0xff pattern:$0x75316420]  ;;  %v467_v9 = vld.sshfl [vmem:[#allocation1 + $0x10] sm:$0xff pattern:$0x75316420] }
  0x51   : > { %385 = vrot.lane.b32.xlu0 %v378_v5, %s2697_s10  ;;  %558 = vst [vmem:[#allocation1 + $0x10] ss:$2 sm:$0xff] %v367_v2 }
  0x52   : > { %381 = vrot.lane.b32.xlu1 %v376_v7, %s2697_s10  ;;  %v465_v10 = vld.sshfl [vmem:[#allocation1] sm:$0xff pattern:$0x75316420]  ;;  %v466_v11 = vld.sshfl [vmem:[#allocation1 + $0x8] sm:$0xff pattern:$0x75316420] }
  0x53   : > { %556 = vst [vmem:[#allocation1] ss:$2 sm:$0xff] %v366_v3  ;;  %469 = vrot.lane.b32.xlu2 %v465_v10, %s2698_s21 }
  0x58   : > { %v561_v12 = vld.sshfl [vmem:[#allocation1 + $0x10] sm:$0xff pattern:$0x75316420]  ;;  %v562_v13 = vld.sshfl [vmem:[#allocation1 + $0x18] sm:$0xff pattern:$0x75316420] }
  0x59   : > { %475 = vrot.lane.b32.xlu0 %v468_v8, %s2698_s21  ;;  %655 = vst [vmem:[#allocation1 + $0x10] ss:$2 sm:$0xff] %v367_v2  ;;  %v648_v2 = vld [vmem:[#allocation6 + $0xc] sm:$0xf]  ;;  %v745_v8 = vld [vmem:[#allocation6 + $0x10] sm:$0xf] }
  0x5a   : > { %v560_v14 = vld.sshfl [vmem:[#allocation1 + $0x8] sm:$0xff pattern:$0x75316420]  ;;  %v559_v15 = vld.sshfl [vmem:[#allocation1] sm:$0xff pattern:$0x75316420] }
  0x5b   : > { %565 = vrot.lane.b32.xlu1 %v560_v14, %s2699_s22  ;;  %653 = vst [vmem:[#allocation1] ss:$2 sm:$0xff] %v366_v3  ;;  %471 = vrot.lane.b32.xlu2 %v466_v11, %s2698_s21 }
  0x60   : > { %v658_v18 = vld.sshfl [vmem:[#allocation1 + $0x10] sm:$0xff pattern:$0x75316420]  ;;  %v659_v19 = vld.sshfl [vmem:[#allocation1 + $0x18] sm:$0xff pattern:$0x75316420] }
  0x61   : > { %563 = vrot.lane.b32.xlu0 %v559_v15, %s2699_s22  ;;  %752 = vst [vmem:[#allocation1 + $0x10] ss:$2 sm:$0xff] %v747_v16 }
  0x62   : > { %v656_v20 = vld.sshfl [vmem:[#allocation1] sm:$0xff pattern:$0x75316420]  ;;  %v657_v21 = vld.sshfl [vmem:[#allocation1 + $0x8] sm:$0xff pattern:$0x75316420] }
  0x63   : > { %567 = vrot.lane.b32.xlu1 %v561_v12, %s2699_s22  ;;  %473 = vrot.lane.b32.xlu2 %v467_v9, %s2698_s21  ;;  %750 = vst [vmem:[#allocation1] ss:$2 sm:$0xff] %v746_v17 }
  0x68   : > { %v2887_v23 = vld.sshfl [vmem:[#allocation1 + $0x10] sm:$0xff pattern:$0x75316420] }
  0x69   : > { %664 = vrot.lane.b32.xlu0 %v658_v18, %s2700_s23  ;;  %836 = vst [vmem:[#allocation1 + $0x10] ss:$2 sm:$0xff] %v831_v22 }
  0x6a   : > { %v2890_v24 = vld.sshfl [vmem:[#allocation1] sm:$0xff pattern:$0x75316420]  ;;  %v2892_v25 = vld.sshfl [vmem:[#allocation1 + $0x8] sm:$0xff pattern:$0x75316420] }
  0x6b   : > { %569 = vrot.lane.b32.xlu1 %v562_v13, %s2699_s22  ;;  %834 = vst [vmem:[#allocation1] ss:$2 sm:$0xff] %v746_v17  ;;  %662 = vrot.lane.b32.xlu2 %v657_v21, %s2700_s23 }
  0x70   : > { %v839_v26 = vld.sshfl [vmem:[#allocation1 + $0x10] sm:$0xff pattern:$0x75316420]  ;;  %v840_v27 = vld.sshfl [vmem:[#allocation1 + $0x18] sm:$0xff pattern:$0x75316420] }
  0x71   : > { %666 = vrot.lane.b32.xlu0 %v659_v19, %s2700_s23  ;;  %933 = vst [vmem:[#allocation1 + $0x10] ss:$2 sm:$0xff] %v831_v22  ;;  %v829_v19 = vld [vmem:[#allocation6 + $0x14] sm:$0xf] }
  0x72   : > { %v837_v28 = vld.sshfl [vmem:[#allocation1] sm:$0xff pattern:$0x75316420]  ;;  %v838_v29 = vld.sshfl [vmem:[#allocation1 + $0x8] sm:$0xff pattern:$0x75316420] }
  0x73   : > { %841 = vrot.lane.b32.xlu1 %v837_v28, %s2701_s25  ;;  %931 = vst [vmem:[#allocation1] ss:$2 sm:$0xff] %v746_v17  ;;  %660 = vrot.lane.b32.xlu2 %v656_v20, %s2700_s23 }
  0x78   : > { %v936_v30 = vld.sshfl [vmem:[#allocation1 + $0x10] sm:$0xff pattern:$0x75316420]  ;;  %v937_v31 = vld.sshfl [vmem:[#allocation1 + $0x18] sm:$0xff pattern:$0x75316420] }
  0x79   : > { %847 = vrot.lane.b32.xlu0 %v840_v27, %s2701_s25  ;;  %1030 = vst [vmem:[#allocation1 + $0x10] ss:$2 sm:$0xff] %v831_v22 }
  0x7a   : > { %v935_v32 = vld.sshfl [vmem:[#allocation1 + $0x8] sm:$0xff pattern:$0x75316420]  ;;  %v934_v33 = vld.sshfl [vmem:[#allocation1] sm:$0xff pattern:$0x75316420] }
  0x7b   : > { %940 = vrot.lane.b32.xlu1 %v935_v32, %s2702_s26  ;;  %843 = vrot.lane.b32.xlu2 %v838_v29, %s2701_s25  ;;  %1028 = vst [vmem:[#allocation1] ss:$2 sm:$0xff] %v746_v17 }
  0x80   : > { %v1033_v34 = vld.sshfl [vmem:[#allocation1 + $0x10] sm:$0xff pattern:$0x75316420]  ;;  %v1034_v35 = vld.sshfl [vmem:[#allocation1 + $0x18] sm:$0xff pattern:$0x75316420] }
  0x81   : > { %938 = vrot.lane.b32.xlu0 %v934_v33, %s2702_s26  ;;  %1127 = vst [vmem:[#allocation1 + $0x10] ss:$2 sm:$0xff] %v831_v22 }
  0x82   : > { %v1032_v36 = vld.sshfl [vmem:[#allocation1 + $0x8] sm:$0xff pattern:$0x75316420]  ;;  %v1031_v37 = vld.sshfl [vmem:[#allocation1] sm:$0xff pattern:$0x75316420] }
  0x83   : > { %942 = vrot.lane.b32.xlu1 %v936_v30, %s2702_s26  ;;  %845 = vrot.lane.b32.xlu2 %v839_v26, %s2701_s25  ;;  %1125 = vst [vmem:[#allocation1] ss:$2 sm:$0xff] %v746_v17  ;;  %v1023_v26 = vld [vmem:[#allocation6 + $0x1c] sm:$0xf] }
  0x88   : > { %v1130_v38 = vld.sshfl [vmem:[#allocation1 + $0x10] sm:$0xff pattern:$0x75316420]  ;;  %v1131_v41 = vld.sshfl [vmem:[#allocation1 + $0x18] sm:$0xff pattern:$0x75316420] }
  0x89   : > { %1039 = vrot.lane.b32.xlu0 %v1033_v34, %s2703_s19 }
  0x8a   : > { %v1128_v39 = vld.sshfl [vmem:[#allocation1] sm:$0xff pattern:$0x75316420]  ;;  %v1129_v40 = vld.sshfl [vmem:[#allocation1 + $0x8] sm:$0xff pattern:$0x75316420] }
  0x8b   : > { %944 = vrot.lane.b32.xlu1 %v937_v31, %s2702_s26  ;;  %1037 = vrot.lane.b32.xlu2 %v1032_v36, %s2703_s19 }
  0x91   : > { %1041 = vrot.lane.b32.xlu0 %v1034_v35, %s2703_s19 }
  0x93   : > { %1136 = vrot.lane.b32.xlu1 %v1130_v38, %s2704_s20  ;;  %1035 = vrot.lane.b32.xlu2 %v1031_v37, %s2703_s19  ;;  %v1120_v38 = vld [vmem:[#allocation6 + $0x20] sm:$0xf] }
  0x99   : > { %1132 = vrot.lane.b32.xlu0 %v1128_v39, %s2704_s20 }
  0x9b   : > { %1134 = vrot.lane.b32.xlu1 %v1129_v40, %s2704_s20  ;;  %1138 = vrot.lane.b32.xlu2 %v1131_v41, %s2704_s20 }
  0xad   : > { %v470_v42 = vpop.permute.xlu2 %469 }
  0xb5   : > { %v472_v43 = vpop.permute.xlu2 %471 }
  0xb6   : > { %v478_v45 = vsel %vm477_vm1, %v470_v42, %v472_v43 }
  0xb7   : > { %2335 = vmatpush.msk.msra.mxu3 %vm395_vm2, %v478_v45 }
  0xb8   : > { %2336 = vmatmul.msk.f32.vlgmr.msra.gmra.mxu3 %vm391_vm3, %v365_v44 }
  0xbb   : > { %v384_v46 = vpop.permute.xlu0 %383 }
  0xbc   : > { %v380_v47 = vpop.permute.xlu1 %379 }
  0xbd   : > { %v474_v48 = vpop.permute.xlu2 %473 }
  0xbe   : > { %v479_v52 = vsel %vm477_vm1, %v472_v43, %v474_v48 }
  0xc3   : > { %v386_v49 = vpop.permute.xlu0 %385 }
  0xc4   : > { %v382_v50 = vpop.permute.xlu1 %381  ;;  %v390_v51 = vsel %vm387_vm4, %v384_v46, %v386_v49 }
  0xc5   : > { %v388_v54 = vsel %vm387_vm4, %v380_v47, %v382_v50  ;;  %v389_v55 = vsel %vm387_vm4, %v382_v50, %v384_v46  ;;  %2333 = vmatpush.msk.msra.mxu2 %vm395_vm2, %v390_v51  ;;  %v663_v56 = vpop.permute.xlu2 %662 }
  0xc6   : > { %2329 = vmatpush.msk.msra.mxu0 %vm395_vm2, %v388_v54  ;;  %2331 = vmatpush.msk.msra.mxu1 %vm395_vm2, %v389_v55  ;;  %v2705_v55 = vmov 0  }
  0xc7   : > { %2332 = vmatmul.msk.f32.vlgmr.msra.gmra.mxu1 %vm391_vm3, %v369_v53  ;;  %2330 = vmatmul.msk.f32.vlgmr.msra.gmra.mxu0 %vm391_vm3, %v369_v53 }
  0xc8   : > { %2337 = vmatpush.msk.msrb.mxu0 %vm395_vm2, %v479_v52  ;;  %2334 = vmatmul.msk.f32.vlgmr.msra.gmra.mxu2 %vm391_vm3, %v369_v53 }
  0xc9   : > { %2524 = vset.pattern.permute.xlu1 %v2705_v55  ;;  %2525 = vset.pattern.permute.xlu0 %v2705_v55 }
  0xcb   : > { %v476_v57 = vpop.permute.xlu0 %475 }
  0xcc   : > { %v480_v58 = vsel %vm477_vm1, %v474_v48, %v476_v57 }
  0xcd   : > { %v566_v59 = vpop.permute.xlu1 %565  ;;  %2339 = vmatpush.msk.msrb.mxu1 %vm395_vm2, %v480_v58  ;;  %v661_v60 = vpop.permute.xlu2 %660 }
  0xce   : > { %v669_v61 = vsel %vm668_vm5, %v661_v60, %v663_v56 }
  0xcf   : > { %2340 = vmatmul.msk.f32.vlgmr.msrb.gmra.mxu1 %vm391_vm3, %v365_v44  ;;  %2338 = vmatmul.msk.f32.vlgmr.msrb.gmra.mxu0 %vm391_vm3, %v365_v44 }
  0xd0   : > { %2347 = vmatpush.msk.msra.mxu1 %vm395_vm2, %v669_v61 }
  0xd2   : > { %2355 = vmatpush.msk.msrb.mxu1 %vm395_vm2, %v2892_v25  ;;  %v926_v25 = vld [vmem:[#allocation6 + $0x18] sm:$0xf] }
  0xd3   : > { %v564_v62 = vpop.permute.xlu0 %563 }
  0xd4   : > { %v572_v1 = vsel %vm571_vm6, %v564_v62, %v566_v59  ;;  %v1264_v62 = vld [vmem:[%s3218_s3] sm:$0xf] }
  0xd5   : > { %v568_v3 = vpop.permute.xlu1 %567  ;;  %2341 = vmatpush.msk.msrb.mxu2 %vm395_vm2, %v572_v1  ;;  %v844_v4 = vpop.permute.xlu2 %843  ;;  %1267 = vperm.xlu1 %2524, %v1264_v62  }
  0xd6   : > { %v573_v5 = vsel %vm571_vm6, %v566_v59, %v568_v3  ;;  %2342 = vmatmul.msk.f32.vlgmr.msrb.gmra.mxu2 %vm391_vm3, %v551_v63 }
  0xd7   : > { %2343 = vmatpush.msk.msrb.mxu3 %vm395_vm2, %v573_v5  ;;  %2348 = vmatmul.msk.f32.vlgmr.msra.gmra.mxu1 %vm391_vm3, %v648_v2 }
  0xd8   : > { %2344 = vmatmul.msk.f32.vlgmr.msrb.gmra.mxu3 %vm391_vm3, %v551_v63 }
  0xdb   : > { %v665_v6 = vpop.permute.xlu0 %664 }
  0xdc   : > { %v670_v7 = vsel %vm668_vm5, %v663_v56, %v665_v6 }
  0xdd   : > { %v570_v9 = vpop.permute.xlu1 %569  ;;  %2349 = vmatpush.msk.msra.mxu2 %vm395_vm2, %v670_v7  ;;  %v846_v10 = vpop.permute.xlu2 %845 }
  0xde   : > { %v574_v11 = vsel %vm571_vm6, %v568_v3, %v570_v9  ;;  %2350 = vmatmul.msk.f32.vlgmr.msra.gmra.mxu2 %vm391_vm3, %v648_v2  ;;  %v851_v12 = vsel %vm849_vm7, %v844_v4, %v846_v10 }
  0xdf   : > { %2345 = vmatpush.msk.msra.mxu0 %vm395_vm2, %v574_v11  ;;  %2356 = vmatmul.msk.f32.vlgmr.msrb.gmra.mxu1 %vm391_vm3, %v745_v8 }
  0xe0   : > { %2346 = vmatmul.msk.f32.vlgmr.msra.gmra.mxu0 %vm391_vm3, %v551_v63  ;;  %2357 = vmatpush.msk.msrb.mxu2 %vm395_vm2, %v2887_v23 }
  0xe1   : > { %2353 = vmatpush.msk.msrb.mxu0 %vm395_vm2, %v2890_v24 }
  0xe3   : > { %2361 = vmatpush.msk.msra.mxu0 %vm395_vm2, %v851_v12  ;;  %v667_v13 = vpop.permute.xlu0 %666 }
  0xe4   : > { %v671_v14 = vsel %vm668_vm5, %v665_v6, %v667_v13 }
  0xe5   : > { %v842_v15 = vpop.permute.xlu1 %841  ;;  %2351 = vmatpush.msk.msra.mxu3 %vm395_vm2, %v671_v14  ;;  %v1038_v16 = vpop.permute.xlu2 %1037 }
  0xe6   : > { %v850_v17 = vsel %vm849_vm7, %v842_v15, %v844_v4  ;;  %2352 = vmatmul.msk.f32.vlgmr.msra.gmra.mxu3 %vm391_vm3, %v648_v2  ;;  %2358 = vmatmul.msk.f32.vlgmr.msrb.gmra.mxu2 %vm391_vm3, %v745_v8 }
  0xe7   : > { %2359 = vmatpush.msk.msrb.mxu3 %vm395_vm2, %v850_v17 }
  0xe8   : > { %2354 = vmatmul.msk.f32.vlgmr.msrb.gmra.mxu0 %vm391_vm3, %v745_v8  ;;  %v1273_v8 = vld [vmem:[%s3219_s4] sm:$0xf] }
  0xe9   : > { %1276 = vperm.xlu1 %2524, %v1273_v8  }
  0xeb   : > { %v848_v18 = vpop.permute.xlu0 %847 }
  0xec   : > { %v852_v20 = vsel %vm849_vm7, %v846_v10, %v848_v18 }
  0xed   : > { %v941_v21 = vpop.permute.xlu1 %940  ;;  %2363 = vmatpush.msk.msra.mxu1 %vm395_vm2, %v852_v20  ;;  %v1036_v22 = vpop.permute.xlu2 %1035 }
  0xee   : > { %2360 = vmatmul.msk.f32.vlgmr.msrb.gmra.mxu3 %vm391_vm3, %v829_v19  ;;  %2364 = vmatmul.msk.f32.vlgmr.msra.gmra.mxu1 %vm391_vm3, %v829_v19  ;;  %v1044_v23 = vsel %vm1043_vm8, %v1036_v22, %v1038_v16 }
  0xef   : > { %2371 = vmatpush.msk.msrb.mxu1 %vm395_vm2, %v1044_v23 }
  0xf0   : > { %2362 = vmatmul.msk.f32.vlgmr.msra.gmra.mxu0 %vm391_vm3, %v829_v19 }
  0xf3   : > { %v939_v24 = vpop.permute.xlu0 %938 }
  0xf4   : > { %v947_v27 = vsel %vm946_vm9, %v939_v24, %v941_v21 }
  0xf5   : > { %v943_v28 = vpop.permute.xlu1 %942  ;;  %2365 = vmatpush.msk.msra.mxu2 %vm395_vm2, %v947_v27  ;;  %v1139_v35 = vpop.permute.xlu2 %1138 }
  0xf6   : > { %v948_v29 = vsel %vm946_vm9, %v941_v21, %v943_v28  ;;  %2366 = vmatmul.msk.f32.vlgmr.msra.gmra.mxu2 %vm391_vm3, %v926_v25  ;;  %2372 = vmatmul.msk.f32.vlgmr.msrb.gmra.mxu1 %vm391_vm3, %v1023_v26 }
  0xf7   : > { %2367 = vmatpush.msk.msra.mxu3 %vm395_vm2, %v948_v29 }
  0xf8   : > { %2368 = vmatmul.msk.f32.vlgmr.msra.gmra.mxu3 %vm391_vm3, %v926_v25 }
  0xfb   : > { %v1040_v30 = vpop.permute.xlu0 %1039 }
  0xfc   : > { %v1045_v31 = vsel %vm1043_vm8, %v1038_v16, %v1040_v30  ;;  %v1216_v16 = vsel %vm358_vm0, 1, %v2705_v55 }
  0xfd   : > { %v945_v32 = vpop.permute.xlu1 %944  ;;  %2373 = vmatpush.msk.msrb.mxu2 %vm395_vm2, %v1045_v31  ;;  %v1219_v22 = vperm.slane %v1216_v16, 2  ;;  %v1217_v27 = vperm.slane %v1216_v16, 0 }
  0xfe   : > { %v949_v33 = vsel %vm946_vm9, %v943_v28, %v945_v32  ;;  %2374 = vmatmul.msk.f32.vlgmr.msrb.gmra.mxu2 %vm391_vm3, %v1023_v26  ;;  %v1218_v28 = vperm.slane %v1216_v16, 1 }
  0xff   : > { %2369 = vmatpush.msk.msrb.mxu0 %vm395_vm2, %v949_v33  ;;  %vm3003_vm11 = vcmp.eq.s32.totalorder %v1219_v22, 1  ;;  %vm3007_vm12 = vcmp.eq.s32.totalorder %v1217_v27, 1 }
 0x100   : > { %2370 = vmatmul.msk.f32.vlgmr.msrb.gmra.mxu0 %vm391_vm3, %v926_v25  ;;  %vm3011_vm13 = vcmp.eq.s32.totalorder %v1218_v28, 1 }
 0x103   : > { %v1042_v34 = vpop.permute.xlu0 %1041 }
 0x104   : > { %v1046_v36 = vsel %vm1043_vm8, %v1040_v30, %v1042_v34 }
 0x105   : > { %v1137_v37 = vpop.permute.xlu1 %1136  ;;  %2375 = vmatpush.msk.msrb.mxu3 %vm395_vm2, %v1046_v36 }
 0x106   : > { %v1143_v39 = vsel %vm1140_vm10, %v1137_v37, %v1139_v35  ;;  %2376 = vmatmul.msk.f32.vlgmr.msrb.gmra.mxu3 %vm391_vm3, %v1023_v26 }
 0x107   : > { %2381 = vmatpush.msk.msra.mxu2 %vm395_vm2, %v1143_v39 }
 0x108   : > { %2382 = vmatmul.msk.f32.vlgmr.msra.gmra.mxu2 %vm391_vm3, %v1120_v38 }
 0x10b   : > { %v1133_v40 = vpop.permute.xlu0 %1132 }
 0x10d   : > { %v1135_v41 = vpop.permute.xlu1 %1134 }
 0x10e   : > { %v1142_v42 = vsel %vm1140_vm10, %v1135_v41, %v1137_v37  ;;  %v1141_v43 = vsel %vm1140_vm10, %v1133_v40, %v1135_v41 }
 0x10f   : > { %2377 = vmatpush.msk.msra.mxu0 %vm395_vm2, %v1141_v43  ;;  %2379 = vmatpush.msk.msra.mxu1 %vm395_vm2, %v1142_v42 }
 0x110   : > { %2378 = vmatmul.msk.f32.vlgmr.msra.gmra.mxu0 %vm391_vm3, %v1120_v38  ;;  %2380 = vmatmul.msk.f32.vlgmr.msra.gmra.mxu1 %vm391_vm3, %v1120_v38 }
 0x13b   : > { %v507_v47 = vpop.f32.mrf.mxu3 }
 0x144   : > { %v419_v44 = vpop.f32.mrf.mxu0  ;;  %v439_v46 = vpop.f32.mrf.mxu1 }
 0x145   : > { %v508_v1 = vadd.f32 %v507_v47, %v419_v44 }
 0x14b   : > { %v459_v45 = vpop.f32.mrf.mxu2 }
 0x14c   : > { %v527_v48 = vpop.f32.mrf.mxu0  ;;  %v547_v50 = vpop.f32.mrf.mxu1 }
 0x14d   : > { %v548_v61 = vadd.f32 %v547_v50, %v459_v45  ;;  %v528_v2 = vadd.f32 %v527_v48, %v439_v46 }
 0x154   : > { %v698_v54 = vpop.f32.mrf.mxu1 }
 0x159   : > { %v601_v49 = vpop.f32.mrf.mxu2 }
 0x15a   : > { %v644_v6 = vadd.f32 %v601_v49, %v508_v1 }
 0x15b   : > { %v621_v51 = vpop.f32.mrf.mxu3 }
 0x15c   : > { %v802_v59 = vpop.f32.mrf.mxu1  ;;  %v645_v9 = vadd.f32 %v621_v51, %v528_v2  ;;  %v741_v11 = vadd.f32 %v698_v54, %v644_v6  ;;  %v1268_v6 = vpop.permute.xlu1 %1267 }
 0x15d   : > { %v641_v52 = vpop.f32.mrf.mxu0 }
 0x15e   : > { %v646_v3 = vadd.f32 %v641_v52, %v548_v61 }
 0x161   : > { %v718_v53 = vpop.f32.mrf.mxu2 }
 0x162   : > { %v742_v12 = vadd.f32 %v718_v53, %v645_v9 }
 0x164   : > { %v826_v19 = vadd.f32 %v802_v59, %v742_v12 }
 0x165   : > { %v782_v58 = vpop.f32.mrf.mxu0 }
 0x166   : > { %v825_v15 = vadd.f32 %v782_v58, %v741_v11 }
 0x169   : > { %v738_v56 = vpop.f32.mrf.mxu3  ;;  %v822_v57 = vpop.f32.mrf.mxu2 }
 0x16a   : > { %v743_v7 = vadd.f32 %v738_v56, %v646_v3 }
 0x16b   : > { %v919_v5 = vpop.f32.mrf.mxu1 }
 0x16c   : > { %v827_v13 = vadd.f32 %v822_v57, %v743_v7 }
 0x16d   : > { %v899_v4 = vpop.f32.mrf.mxu0 }
 0x16e   : > { %v924_v20 = vadd.f32 %v919_v5, %v827_v13  ;;  %v923_v23 = vadd.f32 %v899_v4, %v826_v19  ;;  %v1287_v19 = vperm.slane %v2864_v0, 1 }
 0x171   : > { %v879_v60 = vpop.f32.mrf.mxu3 }
 0x172   : > { %v922_v21 = vadd.f32 %v879_v60, %v825_v15 }
 0x173   : > { %v1073_v18 = vpop.f32.mrf.mxu1 }
 0x179   : > { %v976_v63 = vpop.f32.mrf.mxu2 }
 0x17a   : > { %v1019_v24 = vadd.f32 %v976_v63, %v922_v21  ;;  %v1288_v21 = vperm.slane %v2864_v0, 2 }
 0x17b   : > { %v996_v10 = vpop.f32.mrf.mxu3 }
 0x17c   : > { %v1020_v29 = vadd.f32 %v996_v10, %v923_v23  ;;  %v1116_v33 = vadd.f32 %v1073_v18, %v1019_v24 }
 0x17d   : > { %v1016_v17 = vpop.f32.mrf.mxu0 }
 0x17e   : > { %v1021_v25 = vadd.f32 %v1016_v17, %v924_v20  ;;  %v1277_v20 = vpop.permute.xlu1 %1276 }
 0x181   : > { %v1093_v14 = vpop.f32.mrf.mxu2 }
 0x182   : > { %v1117_v34 = vadd.f32 %v1093_v14, %v1020_v29 }
 0x189   : > { %v1113_v26 = vpop.f32.mrf.mxu3 }
 0x18a   : > { %v1118_v30 = vadd.f32 %v1113_v26, %v1021_v25  ;;  %v1286_v25 = vperm.slane %v2864_v0, 0 }
 0x18b   : > { %v1210_v31 = vpop.f32.mrf.mxu2 }
 0x18c   : > { %v1215_v35 = vadd.f32 %v1210_v31, %v1118_v30 }
 0x18d   : > { %v1170_v36 = vpop.f32.mrf.mxu0  ;;  %v1190_v38 = vpop.f32.mrf.mxu1 }
 0x18e   : > { %v1213_v40 = vadd.f32 %v1170_v36, %v1116_v33  ;;  %v1214_v41 = vadd.f32 %v1190_v38, %v1117_v34  ;;  %v1225_v42 = vsel %vm3003_vm11, %v1215_v35, 0.0 }
 0x18f   : > { %v1236_v45 = vmul.f32 %v1225_v42, %v1225_v42  ;;  %v1229_v51 = vsel %vm395_vm2, %v1225_v42, 0.0 }
 0x190   : > { %v1223_v43 = vsel %vm3007_vm12, %v1213_v40, 0.0  ;;  %v1224_v44 = vsel %vm3011_vm13, %v1214_v41, 0.0 }
 0x191   : > { %v1226_v46 = vsel %vm395_vm2, %v1223_v43, 0.0  ;;  %v1234_v47 = vmul.f32 %v1223_v43, %v1223_v43  ;;  %v1227_v48 = vsel %vm395_vm2, %v1224_v44, 0.0  ;;  %v1235_v49 = vmul.f32 %v1224_v44, %v1224_v44 }
 0x192   : > { %v1228_v50 = vadd.f32 %v1227_v48, %v1226_v46  ;;  %v1240_v56 = vsel %vm395_vm2, %v1236_v45, 0.0 }
 0x193   : > { %v1237_v52 = vsel %vm395_vm2, %v1234_v47, 0.0  ;;  %v1238_v53 = vsel %vm395_vm2, %v1235_v49, 0.0 }
 0x194   : > { %v1230_v54 = vadd.f32 %v1229_v51, %v1228_v50  ;;  %v1239_v55 = vadd.f32 %v1238_v53, %v1237_v52 }
 0x196   : > { %1231 = vadd.xlane.f32.xlu2 %v1230_v54  ;;  %v1241_v57 = vadd.f32 %v1240_v56, %v1239_v55 }
 0x198   : > { %1242 = vadd.xlane.f32.xlu0 %v1241_v57 }
 0x209   : > { %v1232_v58 = vpop.xlane.xlu2 %1231 }
 0x20a   : > { %v1233_v59 = vmul.f32 0.00390625, %v1232_v58 }
 0x20b   : > { %v1243_v60 = vpop.xlane.xlu0 %1242 }
 0x20c   : > { %v1244_v61 = vmul.f32 0.00390625, %v1243_v60  ;;  %v1245_v62 = vmul.f32 %v1233_v59, %v1233_v59  ;;  %v1247_v9 = vsub.f32 %v1213_v40, %v1233_v59  ;;  %v1248_v10 = vsub.f32 %v1214_v41, %v1233_v59 }
 0x20d   : > { %v1249_v11 = vsub.f32 %v1215_v35, %v1233_v59 }
 0x20e   : > { %v1246_v63 = vsub.f32 %v1244_v61, %v1245_v62 }
 0x210   : > { %v1250_v1 = vadd.f32 1e-05, %v1246_v63 }
 0x212   : > { %2526 = vrsqrt.f32 %v1250_v1  ;;  %vm1257_vm15 = vweird.f32 %v1250_v1 }
 0x218   : > { %v2527_v2 = vpop.eup %2526 }
 0x219   : > { %v1252_v3 = vmul.f32 %v2527_v2, %v1250_v1  ;;  %vm1258_vm14 = vweird.f32 %v2527_v2 }
 0x21a   : > { %vm1259_vm0 = vmor %vm1257_vm15, %vm1258_vm14 }
 0x21b   : > { %v1253_v4 = vmul.f32 %v2527_v2, %v1252_v3 }
 0x21d   : > { %v1254_v5 = vmul.f32 0.5, %v1253_v4 }
 0x21f   : > { %v1255_v7 = vsub.f32 1.5, %v1254_v5 }
 0x221   : > { %v1256_v8 = vmul.f32 %v2527_v2, %v1255_v7 }
 0x223   : > { %v1260_v12 = vsel %vm1259_vm0, %v2527_v2, %v1256_v8 }
 0x224   : > { %v1261_v13 = vmul.f32 %v1260_v12, %v1247_v9  ;;  %v1262_v14 = vmul.f32 %v1260_v12, %v1248_v10  ;;  %v1263_v15 = vmul.f32 %v1260_v12, %v1249_v11  ;;  %v2184_v12 = vld [vmem:[%s3221_s6] sm:$0xf] }
 0x226   : > { %v1270_v16 = vmul.f32 %v1268_v6, %v1261_v13  ;;  %v1271_v17 = vmul.f32 %v1268_v6, %v1262_v14  ;;  %v1272_v18 = vmul.f32 %v1268_v6, %v1263_v15  ;;  %v2193_v14 = vld [vmem:[%s3222_s7] sm:$0xf] }
 0x228   : > { %v1279_v22 = vadd.f32 %v1277_v20, %v1270_v16  ;;  %v1280_v23 = vadd.f32 %v1277_v20, %v1271_v17  ;;  %v1281_v24 = vadd.f32 %v1277_v20, %v1272_v18  ;;  %v1306_v18 = vld [vmem:[#allocation8 + $0x4] sm:$0xf] }
 0x22a   : > { %v1282_v26 = vmax.f32 %v1279_v22, 0.0  ;;  %v1283_v27 = vmax.f32 %v1280_v23, 0.0  ;;  %v1284_v28 = vmax.f32 %v1281_v24, 0.0 }
 0x22c   : > { %v1293_v29 = vmul.f32 %v1287_v19, %v1283_v27  ;;  %v1294_v30 = vmul.f32 %v1288_v21, %v1284_v28  ;;  %v1292_v31 = vmul.f32 %v1286_v25, %v1282_v26  ;;  %v1302_v27 = vld [vmem:[#allocation8] sm:$0xf] }
 0x22e   : > { %v1297_v33 = vrot.slane %v1293_v29, 4  ;;  %1301 = vst [vmem:[#allocation2 + $0xc] sm:$0xf] %v1294_v30  ;;  %v1484_v29 = vld [vmem:[#allocation8 + $0x8] sm:$0xf] }
 0x230   : > { %v3031_v34 = vsel %vm395_vm2, %v1292_v31, %v1297_v33 }
 0x231   : > { %1300 = vst [vmem:[#allocation2 + $0x4] sm:$0xff] %v3031_v34 }
 0x235   : > { %v1678_v52 = vld [vmem:[#allocation2 + $0xc] sm:$0xf] }
 0x236   : > { %v1762_v57 = vld [vmem:[#allocation2 + $0xc] sm:$0xff] }
 0x238   : > { %v1303_v35 = vld [vmem:[#allocation2] sm:$0xff]  ;;  %v1304_v36 = vld [vmem:[#allocation2 + $0x8] sm:$0xff] }
 0x239   : > { %1309 = vst [vmem:[#allocation1] ss:$2 sm:$0xff] %v1303_v35 }
 0x23a   : > { %1311 = vst [vmem:[#allocation1 + $0x10] ss:$2 sm:$0xff] %v1304_v36 }
 0x240   : > { %v1312_v38 = vld.sshfl [vmem:[#allocation1] sm:$0xff pattern:$0x75316420]  ;;  %v1313_v40 = vld.sshfl [vmem:[#allocation1 + $0x8] sm:$0xff pattern:$0x75316420] }
 0x241   : > { %v1315_v0 = vld.sshfl [vmem:[#allocation1 + $0x18] sm:$0xff pattern:$0x75316420]  ;;  %1316 = vrot.lane.b32.xlu1 %v1312_v38, %s2697_s10  ;;  %1396 = vst [vmem:[#allocation1] ss:$2 sm:$0xff] %v1303_v35 }
 0x242   : > { %1322 = vrot.lane.b32.xlu2 %v1315_v0, %s2697_s10  ;;  %v1314_v41 = vld.sshfl [vmem:[#allocation1 + $0x10] sm:$0xff pattern:$0x75316420] }
 0x243   : > { %1398 = vst [vmem:[#allocation1 + $0x10] ss:$2 sm:$0xff] %v1304_v36 }
 0x248   : > { %v1400_v42 = vld.sshfl [vmem:[#allocation1 + $0x8] sm:$0xff pattern:$0x75316420]  ;;  %v1399_v43 = vld.sshfl [vmem:[#allocation1] sm:$0xff pattern:$0x75316420] }
 0x249   : > { %1318 = vrot.lane.b32.xlu1 %v1313_v40, %s2697_s10  ;;  %1405 = vrot.lane.b32.xlu0 %v1400_v42, %s2698_s21  ;;  %1489 = vst [vmem:[#allocation1] ss:$2 sm:$0xff] %v1303_v35 }
 0x24a   : > { %v1401_v44 = vld.sshfl [vmem:[#allocation1 + $0x10] sm:$0xff pattern:$0x75316420]  ;;  %v1402_v45 = vld.sshfl [vmem:[#allocation1 + $0x18] sm:$0xff pattern:$0x75316420] }
 0x24b   : > { %1491 = vst [vmem:[#allocation1 + $0x10] ss:$2 sm:$0xff] %v1304_v36 }
 0x250   : > { %v1493_v46 = vld.sshfl [vmem:[#allocation1 + $0x8] sm:$0xff pattern:$0x75316420]  ;;  %v1492_v47 = vld.sshfl [vmem:[#allocation1] sm:$0xff pattern:$0x75316420] }
 0x251   : > { %1320 = vrot.lane.b32.xlu1 %v1314_v41, %s2697_s10  ;;  %1498 = vrot.lane.b32.xlu0 %v1493_v46, %s2699_s22  ;;  %1585 = vst [vmem:[#allocation1] ss:$2 sm:$0xff] %v1303_v35 }
 0x252   : > { %1496 = vrot.lane.b32.xlu2 %v1492_v47, %s2699_s22  ;;  %v1494_v48 = vld.sshfl [vmem:[#allocation1 + $0x10] sm:$0xff pattern:$0x75316420]  ;;  %v1495_v49 = vld.sshfl [vmem:[#allocation1 + $0x18] sm:$0xff pattern:$0x75316420] }
 0x253   : > { %1587 = vst [vmem:[#allocation1 + $0x10] ss:$2 sm:$0xff] %v1304_v36 }
 0x258   : > { %v1588_v50 = vld.sshfl [vmem:[#allocation1] sm:$0xff pattern:$0x75316420]  ;;  %v1589_v51 = vld.sshfl [vmem:[#allocation1 + $0x8] sm:$0xff pattern:$0x75316420] }
 0x259   : > { %1403 = vrot.lane.b32.xlu1 %v1399_v43, %s2698_s21  ;;  %1592 = vrot.lane.b32.xlu0 %v1588_v50, %s2700_s23  ;;  %1681 = vst [vmem:[#allocation1] ss:$2 sm:$0xff] %v3031_v34 }
 0x25a   : > { %1502 = vrot.lane.b32.xlu2 %v1495_v49, %s2699_s22  ;;  %v1590_v53 = vld.sshfl [vmem:[#allocation1 + $0x10] sm:$0xff pattern:$0x75316420]  ;;  %v1591_v54 = vld.sshfl [vmem:[#allocation1 + $0x18] sm:$0xff pattern:$0x75316420] }
 0x25b   : > { %1683 = vst [vmem:[#allocation1 + $0x10] ss:$2 sm:$0xff] %v1678_v52 }
 0x260   : > { %v3045_v55 = vld.sshfl [vmem:[#allocation1] sm:$0xff pattern:$0x75316420]  ;;  %v3047_v56 = vld.sshfl [vmem:[#allocation1 + $0x8] sm:$0xff pattern:$0x75316420] }
 0x261   : > { %1765 = vst [vmem:[#allocation1] ss:$2 sm:$0xff] %v3031_v34  ;;  %1407 = vrot.lane.b32.xlu1 %v1401_v44, %s2698_s21  ;;  %1598 = vrot.lane.b32.xlu0 %v1591_v54, %s2700_s23 }
 0x262   : > { %1596 = vrot.lane.b32.xlu2 %v1590_v53, %s2700_s23  ;;  %v3053_v58 = vld.sshfl [vmem:[#allocation1 + $0x10] sm:$0xff pattern:$0x75316420] }
 0x263   : > { %1767 = vst [vmem:[#allocation1 + $0x10] ss:$2 sm:$0xff] %v1762_v57 }
 0x268   : > { %v1769_v59 = vld.sshfl [vmem:[#allocation1 + $0x8] sm:$0xff pattern:$0x75316420]  ;;  %v1768_v60 = vld.sshfl [vmem:[#allocation1] sm:$0xff pattern:$0x75316420] }
 0x269   : > { %1409 = vrot.lane.b32.xlu1 %v1402_v45, %s2698_s21  ;;  %1861 = vst [vmem:[#allocation1] ss:$2 sm:$0xff] %v3031_v34 }
 0x26a   : > { %v1770_v61 = vld.sshfl [vmem:[#allocation1 + $0x10] sm:$0xff pattern:$0x75316420]  ;;  %v1771_v62 = vld.sshfl [vmem:[#allocation1 + $0x18] sm:$0xff pattern:$0x75316420]  ;;  %1774 = vrot.lane.b32.xlu2 %v1769_v59, %s2701_s25 }
 0x26b   : > { %1863 = vst [vmem:[#allocation1 + $0x10] ss:$2 sm:$0xff] %v1762_v57  ;;  %1776 = vrot.lane.b32.xlu0 %v1770_v61, %s2701_s25  ;;  %v1760_v59 = vld [vmem:[#allocation8 + $0x14] sm:$0xf] }
 0x270   : > { %v1865_v63 = vld.sshfl [vmem:[#allocation1 + $0x8] sm:$0xff pattern:$0x75316420]  ;;  %v1864_v1 = vld.sshfl [vmem:[#allocation1] sm:$0xff pattern:$0x75316420] }
 0x271   : > { %1500 = vrot.lane.b32.xlu1 %v1494_v48, %s2699_s22  ;;  %1957 = vst [vmem:[#allocation1] ss:$2 sm:$0xff] %v3031_v34  ;;  %v1580_v48 = vld [vmem:[#allocation8 + $0xc] sm:$0xf]  ;;  %s2444_s22 = smul.u32 12, %s2775_s12  ;;  %s2227_s12 = sshll.u32 %s2867_s18, 4  ;;  %s2228_s12 = int_to_ptr.vmem [resolvable:$true] %s2227_s12 }
 0x272   : > { %v1866_v2 = vld.sshfl [vmem:[#allocation1 + $0x10] sm:$0xff pattern:$0x75316420]  ;;  %1868 = vrot.lane.b32.xlu2 %v1864_v1, %s2702_s26  ;;  %v1867_v3 = vld.sshfl [vmem:[#allocation1 + $0x18] sm:$0xff pattern:$0x75316420] }
 0x273   : > { %1870 = vrot.lane.b32.xlu0 %v1865_v63, %s2702_s26  ;;  %1959 = vst [vmem:[#allocation1 + $0x10] ss:$2 sm:$0xff] %v1762_v57 }
 0x278   : > { %v1961_v4 = vld.sshfl [vmem:[#allocation1 + $0x8] sm:$0xff pattern:$0x75316420]  ;;  %v1960_v5 = vld.sshfl [vmem:[#allocation1] sm:$0xff pattern:$0x75316420] }
 0x279   : > { %1594 = vrot.lane.b32.xlu1 %v1589_v51, %s2700_s23  ;;  %2053 = vst [vmem:[#allocation1] ss:$2 sm:$0xff] %v3031_v34  ;;  %v1676_v51 = vld [vmem:[#allocation8 + $0x10] sm:$0xf] }
 0x27a   : > { %1874 = vrot.lane.b32.xlu2 %v1867_v3, %s2702_s26  ;;  %v1962_v6 = vld.sshfl [vmem:[#allocation1 + $0x10] sm:$0xff pattern:$0x75316420]  ;;  %v1963_v7 = vld.sshfl [vmem:[#allocation1 + $0x18] sm:$0xff pattern:$0x75316420] }
 0x27b   : > { %1964 = vrot.lane.b32.xlu0 %v1960_v5, %s2703_s19  ;;  %2055 = vst [vmem:[#allocation1 + $0x10] ss:$2 sm:$0xff] %v1762_v57 }
 0x280   : > { %v2057_v8 = vld.sshfl [vmem:[#allocation1 + $0x8] sm:$0xff pattern:$0x75316420]  ;;  %v2056_v10 = vld.sshfl [vmem:[#allocation1] sm:$0xff pattern:$0x75316420] }
 0x281   : > { %1772 = vrot.lane.b32.xlu1 %v1768_v60, %s2701_s25 }
 0x282   : > { %1968 = vrot.lane.b32.xlu2 %v1962_v6, %s2703_s19  ;;  %v2058_v9 = vld.sshfl [vmem:[#allocation1 + $0x10] sm:$0xff pattern:$0x75316420]  ;;  %v2059_v11 = vld.sshfl [vmem:[#allocation1 + $0x18] sm:$0xff pattern:$0x75316420] }
 0x283   : > { %1970 = vrot.lane.b32.xlu0 %v1963_v7, %s2703_s19 }
 0x289   : > { %1778 = vrot.lane.b32.xlu1 %v1771_v62, %s2701_s25 }
 0x28a   : > { %2062 = vrot.lane.b32.xlu2 %v2057_v8, %s2704_s20  ;;  %v1952_v8 = vld [vmem:[#allocation8 + $0x1c] sm:$0xf] }
 0x28b   : > { %2064 = vrot.lane.b32.xlu0 %v2058_v9, %s2704_s20 }
 0x291   : > { %1872 = vrot.lane.b32.xlu1 %v1866_v2, %s2702_s26  ;;  %s2225_s26 = scalar_lea.hbm %s3223_s8, %s2444_s22 }
 0x299   : > { %1966 = vrot.lane.b32.xlu1 %v1961_v4, %s2703_s19  ;;  %s2229_s19 = sshll.u32 %s2225_s26, 4  ;;  %s2230_s19 = int_to_ptr.hbm [resolvable:$true] %s2229_s19 }
 0x29a   : > { %s2634_s17 = sshra.s32 %s2230_s19, 4  ;;  %s2635_s17 = int_to_ptr.hbm [resolvable:$true] %s2634_s17 }
 0x29b   : > { %s2636_s29 = scalar_lea.hbm %s2635_s17, 12  ;;  %p2641_p8 = scmp.lt.s32.totalorder %s2635_s17, %s3223_s8 }
 0x29c   : > { %v1323_v15 = vpop.permute.xlu2 %1322  ;;  %p2637_p1 = scmp.ne.s32.totalorder %s2635_s17, %s2636_s29  ;;  %p2642_p9 = scmp.lt.s32.totalorder %s2640_s2, %s2636_s29 }
 0x29e   : > { %p2638_p4 = pnand %p2637_p1, %p2817_p7  ;;  %p2643_p10 = por %p2642_p9, %p2641_p8 }
 0x2a0   : > { %p2639_p13 = pneg %p2638_p4 }
 0x2a1   : > { %2060 = vrot.lane.b32.xlu1 %v2056_v10, %s2704_s20 }
 0x2a2   : > { %p2644_p11 = pnand %p2643_p10, %p2639_p13 }
 0x2a9   : > { %2066 = vrot.lane.b32.xlu1 %v2059_v11, %s2704_s20  ;;  %s2214_s20 = scalar_lea.sflag [#allocation5], %s2846_s11 }
 0x2ac   : > { %v1497_v20 = vpop.permute.xlu2 %1496 }
 0x2b1   : > { %2187 = vperm.xlu1 %2524, %v2184_v12  }
 0x2b3   : > { %v1317_v13 = vpop.permute.xlu1 %1316 }
 0x2b4   : > { %v1503_v31 = vpop.permute.xlu2 %1502 }
 0x2b9   : > { %2196 = vperm.xlu1 %2524, %v2193_v14   ;;  %v2048_v14 = vld [vmem:[#allocation8 + $0x20] sm:$0xf] }
 0x2bb   : > { %v1319_v16 = vpop.permute.xlu1 %1318  ;;  %v1406_v17 = vpop.permute.xlu0 %1405 }
 0x2bc   : > { %v1324_v19 = vsel %vm387_vm4, %v1317_v13, %v1319_v16  ;;  %v1597_v36 = vpop.permute.xlu2 %1596 }
 0x2bd   : > { %2383 = vmatpush.msk.msra.mxu3 %vm395_vm2, %v1324_v19 }
 0x2be   : > { %2384 = vmatmul.msk.f32.vlgmr.msra.gmra.mxu3 %vm391_vm3, %v1306_v18 }
 0x2c3   : > { %v1321_v21 = vpop.permute.xlu1 %1320  ;;  %v1499_v22 = vpop.permute.xlu0 %1498 }
 0x2c4   : > { %v1325_v23 = vsel %vm387_vm4, %v1319_v16, %v1321_v21  ;;  %v1326_v24 = vsel %vm387_vm4, %v1321_v21, %v1323_v15  ;;  %v1504_v25 = vsel %vm571_vm6, %v1497_v20, %v1499_v22  ;;  %v1775_v44 = vpop.permute.xlu2 %1774 }
 0x2c5   : > { %2385 = vmatpush.msk.msrb.mxu0 %vm395_vm2, %v1325_v23  ;;  %2387 = vmatpush.msk.msrb.mxu1 %vm395_vm2, %v1326_v24 }
 0x2c6   : > { %2386 = vmatmul.msk.f32.vlgmr.msrb.gmra.mxu0 %vm391_vm3, %v1306_v18  ;;  %2388 = vmatmul.msk.f32.vlgmr.msrb.gmra.mxu1 %vm391_vm3, %v1306_v18 }
 0x2c7   : > { %2395 = vmatpush.msk.msra.mxu1 %vm395_vm2, %v1504_v25 }
 0x2cb   : > { %v1404_v26 = vpop.permute.xlu1 %1403  ;;  %v1593_v30 = vpop.permute.xlu0 %1592 }
 0x2cc   : > { %v1411_v28 = vsel %vm477_vm1, %v1404_v26, %v1406_v17  ;;  %v1869_v53 = vpop.permute.xlu2 %1868 }
 0x2cd   : > { %2389 = vmatpush.msk.msrb.mxu2 %vm395_vm2, %v1411_v28 }
 0x2ce   : > { %2390 = vmatmul.msk.f32.vlgmr.msrb.gmra.mxu2 %vm391_vm3, %v1302_v27  ;;  %2396 = vmatmul.msk.f32.vlgmr.msra.gmra.mxu1 %vm391_vm3, %v1484_v29 }
 0x2d3   : > { %v1408_v33 = vpop.permute.xlu1 %1407  ;;  %v1599_v35 = vpop.permute.xlu0 %1598 }
 0x2d4   : > { %v1412_v34 = vsel %vm477_vm1, %v1406_v17, %v1408_v33  ;;  %v1602_v45 = vsel %vm668_vm5, %v1597_v36, %v1599_v35 }
 0x2d5   : > { %2391 = vmatpush.msk.msrb.mxu3 %vm395_vm2, %v1412_v34 }
 0x2d6   : > { %2392 = vmatmul.msk.f32.vlgmr.msrb.gmra.mxu3 %vm391_vm3, %v1302_v27 }
 0x2db   : > { %v1410_v38 = vpop.permute.xlu1 %1409 }
 0x2dc   : > { %v1413_v40 = vsel %vm477_vm1, %v1408_v33, %v1410_v38 }
 0x2dd   : > { %2393 = vmatpush.msk.msra.mxu0 %vm395_vm2, %v1413_v40  ;;  %v1777_v0 = vpop.permute.xlu0 %1776 }
 0x2de   : > { %2394 = vmatmul.msk.f32.vlgmr.msra.gmra.mxu0 %vm391_vm3, %v1302_v27  ;;  %v1781_v46 = vsel %vm849_vm7, %v1775_v44, %v1777_v0 }
 0x2e3   : > { %v1501_v41 = vpop.permute.xlu1 %1500 }
 0x2e4   : > { %v1505_v42 = vsel %vm571_vm6, %v1499_v22, %v1501_v41  ;;  %v1506_v43 = vsel %vm571_vm6, %v1501_v41, %v1503_v31 }
 0x2e5   : > { %2397 = vmatpush.msk.msra.mxu2 %vm395_vm2, %v1505_v42  ;;  %2399 = vmatpush.msk.msra.mxu3 %vm395_vm2, %v1506_v43  ;;  %v1871_v52 = vpop.permute.xlu0 %1870 }
 0x2e6   : > { %2398 = vmatmul.msk.f32.vlgmr.msra.gmra.mxu2 %vm391_vm3, %v1484_v29  ;;  %2400 = vmatmul.msk.f32.vlgmr.msra.gmra.mxu3 %vm391_vm3, %v1484_v29  ;;  %v1876_v54 = vsel %vm946_vm9, %v1869_v53, %v1871_v52 }
 0x2e7   : > { %2405 = vmatpush.msk.msrb.mxu2 %vm395_vm2, %v1602_v45  ;;  %2407 = vmatpush.msk.msrb.mxu3 %vm395_vm2, %v3045_v55 }
 0x2e9   : > { %2415 = vmatpush.msk.msra.mxu3 %vm395_vm2, %v1781_v46 }
 0x2eb   : > { %v1595_v47 = vpop.permute.xlu1 %1594 }
 0x2ec   : > { %v1600_v49 = vsel %vm668_vm5, %v1593_v30, %v1595_v47  ;;  %v1601_v50 = vsel %vm668_vm5, %v1595_v47, %v1597_v36 }
 0x2ed   : > { %2401 = vmatpush.msk.msrb.mxu0 %vm395_vm2, %v1600_v49  ;;  %2403 = vmatpush.msk.msrb.mxu1 %vm395_vm2, %v1601_v50  ;;  %v1965_v60 = vpop.permute.xlu0 %1964 }
 0x2ee   : > { %2402 = vmatmul.msk.f32.vlgmr.msrb.gmra.mxu0 %vm391_vm3, %v1580_v48  ;;  %2404 = vmatmul.msk.f32.vlgmr.msrb.gmra.mxu1 %vm391_vm3, %v1580_v48 }
 0x2ef   : > { %2406 = vmatmul.msk.f32.vlgmr.msrb.gmra.mxu2 %vm391_vm3, %v1580_v48  ;;  %2408 = vmatmul.msk.f32.vlgmr.msrb.gmra.mxu3 %vm391_vm3, %v1676_v51 }
 0x2f0   : > { %2409 = vmatpush.msk.msra.mxu0 %vm395_vm2, %v3047_v56  ;;  %2411 = vmatpush.msk.msra.mxu1 %vm395_vm2, %v3053_v58  ;;  %v1875_v56 = vpop.permute.xlu2 %1874  ;;  %v1856_v58 = vld [vmem:[#allocation8 + $0x18] sm:$0xf] }
 0x2f2   : > { %2419 = vmatpush.msk.msrb.mxu1 %vm395_vm2, %v1876_v54 }
 0x2f3   : > { %v1773_v55 = vpop.permute.xlu1 %1772 }
 0x2f4   : > { %v1780_v57 = vsel %vm849_vm7, %v1773_v55, %v1775_v44 }
 0x2f5   : > { %2413 = vmatpush.msk.msra.mxu2 %vm395_vm2, %v1780_v57  ;;  %v1971_v63 = vpop.permute.xlu0 %1970 }
 0x2f6   : > { %2410 = vmatmul.msk.f32.vlgmr.msra.gmra.mxu0 %vm391_vm3, %v1676_v51  ;;  %2412 = vmatmul.msk.f32.vlgmr.msra.gmra.mxu1 %vm391_vm3, %v1676_v51 }
 0x2f7   : > { %2414 = vmatmul.msk.f32.vlgmr.msra.gmra.mxu2 %vm391_vm3, %v1760_v59  ;;  %2416 = vmatmul.msk.f32.vlgmr.msra.gmra.mxu3 %vm391_vm3, %v1760_v59 }
 0x2f8   : > { %v1969_v1 = vpop.permute.xlu2 %1968 }
 0x2f9   : > { %v1974_v5 = vsel %vm1043_vm8, %v1969_v1, %v1971_v63 }
 0x2fb   : > { %v1779_v61 = vpop.permute.xlu1 %1778 }
 0x2fc   : > { %v1782_v62 = vsel %vm849_vm7, %v1777_v0, %v1779_v61 }
 0x2fd   : > { %2417 = vmatpush.msk.msrb.mxu0 %vm395_vm2, %v1782_v62  ;;  %v2065_v6 = vpop.permute.xlu0 %2064 }
 0x2fe   : > { %2418 = vmatmul.msk.f32.vlgmr.msrb.gmra.mxu0 %vm391_vm3, %v1760_v59  ;;  %2420 = vmatmul.msk.f32.vlgmr.msrb.gmra.mxu1 %vm391_vm3, %v1856_v58 }
 0x300   : > { %v2063_v11 = vpop.permute.xlu2 %2062 }
 0x301   : > { %v2069_v12 = vsel %vm1140_vm10, %v2063_v11, %v2065_v6 }
 0x303   : > { %v1873_v2 = vpop.permute.xlu1 %1872 }
 0x304   : > { %v1877_v3 = vsel %vm946_vm9, %v1871_v52, %v1873_v2  ;;  %v1878_v4 = vsel %vm946_vm9, %v1873_v2, %v1875_v56 }
 0x305   : > { %2421 = vmatpush.msk.msrb.mxu2 %vm395_vm2, %v1877_v3  ;;  %2423 = vmatpush.msk.msrb.mxu3 %vm395_vm2, %v1878_v4 }
 0x306   : > { %2422 = vmatmul.msk.f32.vlgmr.msrb.gmra.mxu2 %vm391_vm3, %v1856_v58  ;;  %2424 = vmatmul.msk.f32.vlgmr.msrb.gmra.mxu3 %vm391_vm3, %v1856_v58 }
 0x307   : > { %2429 = vmatpush.msk.msra.mxu2 %vm395_vm2, %v1974_v5 }
 0x30b   : > { %v1967_v7 = vpop.permute.xlu1 %1966 }
 0x30c   : > { %v1972_v9 = vsel %vm1043_vm8, %v1965_v60, %v1967_v7  ;;  %v1973_v10 = vsel %vm1043_vm8, %v1967_v7, %v1969_v1 }
 0x30d   : > { %2425 = vmatpush.msk.msra.mxu0 %vm395_vm2, %v1972_v9  ;;  %2427 = vmatpush.msk.msra.mxu1 %vm395_vm2, %v1973_v10 }
 0x30e   : > { %2426 = vmatmul.msk.f32.vlgmr.msra.gmra.mxu0 %vm391_vm3, %v1952_v8  ;;  %2428 = vmatmul.msk.f32.vlgmr.msra.gmra.mxu1 %vm391_vm3, %v1952_v8 }
 0x30f   : > { %2430 = vmatmul.msk.f32.vlgmr.msra.gmra.mxu2 %vm391_vm3, %v1952_v8  ;;  %2433 = vmatpush.msk.msrb.mxu0 %vm395_vm2, %v2069_v12 }
 0x313   : > { %v2061_v13 = vpop.permute.xlu1 %2060 }
 0x314   : > { %v2068_v15 = vsel %vm1140_vm10, %v2061_v13, %v2063_v11 }
 0x315   : > { %2431 = vmatpush.msk.msra.mxu3 %vm395_vm2, %v2068_v15 }
 0x316   : > { %2432 = vmatmul.msk.f32.vlgmr.msra.gmra.mxu3 %vm391_vm3, %v2048_v14  ;;  %2434 = vmatmul.msk.f32.vlgmr.msrb.gmra.mxu0 %vm391_vm3, %v2048_v14 }
 0x31b   : > { %v2067_v16 = vpop.permute.xlu1 %2066 }
 0x31c   : > { %v2070_v17 = vsel %vm1140_vm10, %v2065_v6, %v2067_v16 }
 0x31d   : > { %2435 = vmatpush.msk.msrb.mxu1 %vm395_vm2, %v2070_v17 }
 0x31e   : > { %2436 = vmatmul.msk.f32.vlgmr.msrb.gmra.mxu1 %vm391_vm3, %v2048_v14 }
 0x341   : > { %v1353_v20 = vpop.f32.mrf.mxu3 }
 0x343   : > { %v1373_v18 = vpop.f32.mrf.mxu0  ;;  %v1393_v19 = vpop.f32.mrf.mxu1 }
 0x34b   : > { %v1533_v23 = vpop.f32.mrf.mxu1 }
 0x351   : > { %v1440_v21 = vpop.f32.mrf.mxu2 }
 0x352   : > { %v1441_v40 = vadd.f32 %v1440_v21, %v1353_v20 }
 0x354   : > { %v1576_v44 = vadd.f32 %v1533_v23, %v1441_v40 }
 0x359   : > { %v1460_v24 = vpop.f32.mrf.mxu3 }
 0x35a   : > { %v1461_v34 = vadd.f32 %v1460_v24, %v1373_v18 }
 0x35b   : > { %v1480_v22 = vpop.f32.mrf.mxu0 }
 0x35c   : > { %v1481_v43 = vadd.f32 %v1480_v22, %v1393_v19 }
 0x369   : > { %v1553_v25 = vpop.f32.mrf.mxu2  ;;  %v1573_v28 = vpop.f32.mrf.mxu3 }
 0x36a   : > { %v1577_v38 = vadd.f32 %v1553_v25, %v1461_v34  ;;  %v1578_v49 = vadd.f32 %v1573_v28, %v1481_v43 }
 0x36b   : > { %v1629_v26 = vpop.f32.mrf.mxu0  ;;  %v1649_v27 = vpop.f32.mrf.mxu1 }
 0x36c   : > { %v1673_v41 = vadd.f32 %v1649_v27, %v1577_v38  ;;  %v1672_v50 = vadd.f32 %v1629_v26, %v1576_v44 }
 0x372   : > { %v1669_v29 = vpop.f32.mrf.mxu2  ;;  %v1713_v33 = vpop.f32.mrf.mxu3 }
 0x373   : > { %v1733_v30 = vpop.f32.mrf.mxu0  ;;  %v1753_v31 = vpop.f32.mrf.mxu1  ;;  %v1674_v53 = vadd.f32 %v1669_v29, %v1578_v49  ;;  %v1756_v54 = vadd.f32 %v1713_v33, %v1672_v50 }
 0x374   : > { %v1757_v45 = vadd.f32 %v1733_v30, %v1673_v41 }
 0x375   : > { %v1758_v56 = vadd.f32 %v1753_v31, %v1674_v53  ;;  %v2188_v31 = vpop.permute.xlu1 %2187 }
 0x37a   : > { %v1809_v35 = vpop.f32.mrf.mxu2  ;;  %v1829_v42 = vpop.f32.mrf.mxu3 }
 0x37b   : > { %v1849_v36 = vpop.f32.mrf.mxu0  ;;  %v1905_v0 = vpop.f32.mrf.mxu1  ;;  %v1853_v48 = vadd.f32 %v1829_v42, %v1757_v45  ;;  %v1852_v57 = vadd.f32 %v1809_v35, %v1756_v54 }
 0x37c   : > { %v1854_v58 = vadd.f32 %v1849_v36, %v1758_v56 }
 0x37d   : > { %v1948_v62 = vadd.f32 %v1905_v0, %v1852_v57 }
 0x389   : > { %v1925_v46 = vpop.f32.mrf.mxu2  ;;  %v1945_v55 = vpop.f32.mrf.mxu3 }
 0x38a   : > { %v1949_v51 = vadd.f32 %v1925_v46, %v1853_v48  ;;  %v1950_v1 = vadd.f32 %v1945_v55, %v1854_v58  ;;  %v2203_v48 = vld [vmem:[%s2850_s16 + $0xc] sm:$0xf] }
 0x38b   : > { %v2001_v47 = vpop.f32.mrf.mxu0  ;;  %v2021_v52 = vpop.f32.mrf.mxu1 }
 0x38c   : > { %v2045_v59 = vadd.f32 %v2021_v52, %v1949_v51  ;;  %v2044_v2 = vadd.f32 %v2001_v47, %v1948_v62  ;;  %v2197_v47 = vpop.permute.xlu1 %2196  ;;  %v2202_v52 = vld [vmem:[%s2850_s16 + $0x4] sm:$0xff] }
 0x392   : > { %v2041_v63 = vpop.f32.mrf.mxu2 }
 0x393   : > { %v2117_v60 = vpop.f32.mrf.mxu0  ;;  %v2046_v5 = vadd.f32 %v2041_v63, %v1950_v1 }
 0x394   : > { %v2141_v61 = vadd.f32 %v2117_v60, %v2045_v59 }
 0x396   : > { %v2144_v3 = vsel %vm3011_vm13, %v2141_v61, 0.0 }
 0x397   : > { %v2155_v7 = vmul.f32 %v2144_v3, %v2144_v3  ;;  %v2147_v11 = vsel %vm395_vm2, %v2144_v3, 0.0 }
 0x399   : > { %v2097_v4 = vpop.f32.mrf.mxu3  ;;  %v2158_v18 = vsel %vm395_vm2, %v2155_v7, 0.0 }
 0x39a   : > { %v2140_v6 = vadd.f32 %v2097_v4, %v2044_v2 }
 0x39b   : > { %v2137_v8 = vpop.f32.mrf.mxu1 }
 0x39c   : > { %v2143_v9 = vsel %vm3007_vm12, %v2140_v6, 0.0  ;;  %v2142_v10 = vadd.f32 %v2137_v8, %v2046_v5 }
 0x39d   : > { %v2146_v12 = vsel %vm395_vm2, %v2143_v9, 0.0  ;;  %v2154_v13 = vmul.f32 %v2143_v9, %v2143_v9 }
 0x39e   : > { %v2145_v14 = vsel %vm3003_vm11, %v2142_v10, 0.0  ;;  %v2148_v15 = vadd.f32 %v2147_v11, %v2146_v12 }
 0x39f   : > { %v2156_v39 = vmul.f32 %v2145_v14, %v2145_v14  ;;  %v2149_v16 = vsel %vm395_vm2, %v2145_v14, 0.0  ;;  %v2157_v17 = vsel %vm395_vm2, %v2154_v13, 0.0 }
 0x3a0   : > { %v2150_v19 = vadd.f32 %v2149_v16, %v2148_v15  ;;  %v2159_v37 = vadd.f32 %v2158_v18, %v2157_v17 }
 0x3a1   : > { %v2160_v20 = vsel %vm395_vm2, %v2156_v39, 0.0 }
 0x3a2   : > { %2151 = vadd.xlane.f32.xlu2 %v2150_v19  ;;  %v2161_v21 = vadd.f32 %v2160_v20, %v2159_v37 }
 0x3a4   : > { %2162 = vadd.xlane.f32.xlu0 %v2161_v21 }
 0x415   : > { %v2152_v22 = vpop.xlane.xlu2 %2151 }
 0x416   : > { %v2153_v23 = vmul.f32 0.00390625, %v2152_v22 }
 0x417   : > { %v2163_v24 = vpop.xlane.xlu0 %2162 }
 0x418   : > { %v2164_v32 = vmul.f32 0.00390625, %v2163_v24  ;;  %v2165_v25 = vmul.f32 %v2153_v23, %v2153_v23  ;;  %v2167_v36 = vsub.f32 %v2140_v6, %v2153_v23  ;;  %v2168_v38 = vsub.f32 %v2141_v61, %v2153_v23 }
 0x419   : > { %v2169_v40 = vsub.f32 %v2142_v10, %v2153_v23 }
 0x41a   : > { %v2166_v26 = vsub.f32 %v2164_v32, %v2165_v25 }
 0x41c   : > { %v2170_v27 = vadd.f32 1e-05, %v2166_v26 }
 0x41e   : > { %2528 = vrsqrt.f32 %v2170_v27  ;;  %vm2177_vm3 = vweird.f32 %v2170_v27 }
 0x424   : > { %v2529_v28 = vpop.eup %2528 }
 0x425   : > { %v2172_v29 = vmul.f32 %v2529_v28, %v2170_v27  ;;  %vm2178_vm1 = vweird.f32 %v2529_v28 }
 0x426   : > { %vm2179_vm4 = vmor %vm2177_vm3, %vm2178_vm1 }
 0x427   : > { %v2173_v30 = vmul.f32 %v2529_v28, %v2172_v29 }
 0x429   : > { %v2174_v33 = vmul.f32 0.5, %v2173_v30 }
 0x42b   : > { %v2175_v34 = vsub.f32 1.5, %v2174_v33 }
 0x42d   : > { %v2176_v35 = vmul.f32 %v2529_v28, %v2175_v34 }
 0x42f   : > { %v2180_v0 = vsel %vm2179_vm4, %v2529_v28, %v2176_v35 }
 0x430   : > { %v2181_v41 = vmul.f32 %v2180_v0, %v2167_v36  ;;  %v2182_v42 = vmul.f32 %v2180_v0, %v2168_v38  ;;  %v2183_v43 = vmul.f32 %v2180_v0, %v2169_v40 }
 0x432   : > { %v2190_v44 = vmul.f32 %v2188_v31, %v2181_v41  ;;  %v2191_v45 = vmul.f32 %v2188_v31, %v2182_v42  ;;  %v2192_v46 = vmul.f32 %v2188_v31, %v2183_v43 }
 0x434   : > { %v2200_v49 = vadd.f32 %v2197_v47, %v2191_v45  ;;  %v2201_v50 = vadd.f32 %v2197_v47, %v2192_v46  ;;  %v2199_v51 = vadd.f32 %v2197_v47, %v2190_v44 }
 0x436   : > { %v2206_v53 = vrot.slane %v2200_v49, 4  ;;  %v2210_v54 = vadd.f32 %v2203_v48, %v2201_v50 }
 0x438   : > { %v2207_v55 = vsel %vm395_vm2, %v2199_v51, %v2206_v53  ;;  %2212 = vst [vmem:[%s2867_s18 + $0x8] sm:$0xf] %v2210_v54 }
 0x439   : > { %v2209_v57 = vadd.f32 %v2207_v55, %v2202_v52 }
 0x43b   : > { %2211 = vst [vmem:[%s2867_s18] sm:$0xff] %v2209_v57 }
 0x43c   : > { %2647 = shalt.err (!%p2644_p11)
}
 0x43d   : > { %2455 = dma.vmem_to_hbm [thread:$0]  (%p2817_p7), %s2228_s12, 192, %s2230_s19, %s2214_s20  }
 0x43e PF: > { %s2241_s11 = sand.u32 1, %s2678_s27   ;;  %p3243_p12 = scmp.ge.s32.totalorder %s2690_s30, 2 }
 0x43f   : > { %s2242_s18 = scalar_lea.sflag [#allocation5], %s2241_s11 }
 0x440   : > { %p2469_p0 = pnand %p3243_p12, %p2821_p6 }
 0x442   : > { %p2470_p2 = pneg %p2469_p0 }
 0x444   : > { %2673 = dma.done.wait (%p2470_p2), %s2242_s18, 192  }
 0x445   : > { %2675 = vsyncadd (%p2470_p2), %s2242_s18, 4294967104  ;;  %s3244_s10 = sld [smem:[#allocation13_spill]]  ;;  %p22_p5 = scmp.ge.s32.totalorder %s2795_s24, 4  }
 0x446   : > { %s3245_s29 = sld [smem:[#allocation14_spill]]  ;;  %s3246_s27 = smov %s2682_s28 }
 0x447   : > { %s3248_s30 = smov %s2795_s24  ;;  %24 = sbr.rel (!%p22_p5) target bundleno = 9 (0x9), region = 143 }
 0x44b   : > { %s3247_s28 = smov %s3244_s10 }
 0x44c   :  { %2248 = vsyncpa [#allocation4], 1 }
 0x44d   :  { %2250 = vsyncpa [#allocation4 + $0x1], 1 }
 0x44e   :  { %2251 = vsyncpa [#allocation7], 1 }
 0x44f   :  { %2252 = vsyncpa [#allocation5], 1 }
 0x450   :  { %2254 = vsyncpa [#allocation5 + $0x1], 1 }

</bundles_post_ra>
